<compile_context>
chip_gen: v6e
topology: v6e:2x2x1
jax: 0.10.0
libtpu: 0.0.40
codegen_flags: <defaults>
</compile_context>

<pallas_src>
import jax
import jax.numpy as jnp
import numpy as np
from jax.experimental import pallas as pl
from jax.experimental.pallas import tpu as pltpu


def mpnn_kernel(adj_ref, nf_ref, nrm_ref,
                w_init_ref, we_a_ref, we_n_ref, w_ef1_ref, w_ef2_ref,
                w_ma_ref, w_me_ref, w_uc_ref, w_um_ref,
                w_pool_ref, w_rp_ref, w_rl_ref, b_ref,
                o_ref):
    TB, V, _ = adj_ref.shape
    n_obs = nf_ref.shape[2]
    F = w_init_ref.shape[1]
    L = w_ma_ref.shape[0]
    rows = TB * V
    f32 = jnp.float32
    relu = lambda z: jnp.maximum(z, 0.0)

    adj = adj_ref[...]                           # (TB, V, V)
    nf = nf_ref[...]                             # (TB, V, n_obs)
    nrm = nrm_ref[...]                           # (TB, V, 2)
    inv_norm = nrm[:, :, 0:1]                    # (TB, V, 1)  == 1 / norm
    norm_scaled = nrm[:, :, 1:2]                 # (TB, V, 1)  == norm / max(norm)

    nf2d = nf.reshape(rows, n_obs)               # batch-stacked node features

    # ---- init node embeddings: relu(node_features @ W_init^T) ----
    mu = relu(jnp.dot(nf2d, w_init_ref[...], preferred_element_type=f32))       # (rows, F)

    # ---- edge embeddings ----
    # The per-edge bias-free Linear on [adj_ij, nf_j] decomposes exactly as
    # adj_ij * we_a + nf_j @ We_n^T, and the (adj != 0) {0,1}-mask commutes
    # with the relu (relu(m*z) = m*relu(z)).
    nf_proj = jnp.dot(nf2d, we_n_ref[...], preferred_element_type=f32)          # (rows, F)
    nf_proj = nf_proj.reshape(TB, V, F)
    mask = (adj != 0.0).astype(f32)                                             # (TB, V, V)
    z = adj[:, :, :, None] * we_a_ref[...] + nf_proj[:, None, :, :]             # (TB, V, V, F)
    emb = jnp.sum(mask[:, :, :, None] * relu(z), axis=2) * inv_norm             # (TB, V, F)
    edge_emb = relu(
        jnp.dot(emb.reshape(rows, F), w_ef1_ref[...], preferred_element_type=f32)
        + (norm_scaled * w_ef2_ref[...]).reshape(rows, F))                      # (rows, F)

    # ---- message passing (n_layers is static -> unrolled Python loop) ----
    for l in range(L):
        agg = (jnp.einsum('bvu,buf->bvf', adj, mu.reshape(TB, V, F),
                          preferred_element_type=f32) * inv_norm).reshape(rows, F)
        msg = relu(jnp.dot(agg, w_ma_ref[l], preferred_element_type=f32)
                   + jnp.dot(edge_emb, w_me_ref[l], preferred_element_type=f32))
        mu = relu(jnp.dot(mu, w_uc_ref[l], preferred_element_type=f32)
                  + jnp.dot(msg, w_um_ref[l], preferred_element_type=f32))

    # ---- readout: relu(cat([f_pooled, f_local])) @ w_read + b, split in two ----
    mu3 = mu.reshape(TB, V, F)
    pooled = jnp.sum(mu3, axis=1) * (1.0 / V)                                   # (TB, F)
    h_pooled = jnp.dot(pooled, w_pool_ref[...], preferred_element_type=f32)     # (TB, F)
    s_pool = jnp.sum(relu(h_pooled) * w_rp_ref[...], axis=-1, keepdims=True)    # (TB, 1)
    s_local = jnp.sum(relu(mu3) * w_rl_ref[...], axis=-1)                       # (TB, V)
    out2d = s_local + s_pool + b_ref[...]                                       # (TB, V)
    o_ref[...] = out2d[:, None, :]                                              # (TB, 1, V)


def _pick_tb(batch, n_nodes, n_obs, n_feat,
             target_rows=512, vmem_budget_bytes=12 << 20):
    """Largest divisor of `batch` that (a) keeps stacked rows ~<= target_rows and
    (b) keeps the per-step f32 working set (dominated by the (TB,V,V,F) per-edge
    relu tensor) under a conservative VMEM budget that fits default scoped VMEM."""
    per_graph = 4 * (2 * n_nodes * n_nodes * n_feat      # z and masked relu(z)
                     + 4 * n_nodes * n_nodes              # adj / mask / input copies
                     + 12 * n_nodes * n_feat              # mu / msg / agg / edge_emb temps
                     + 2 * n_nodes * max(n_obs, 1))
    cap_rows = max(1, target_rows // max(n_nodes, 1))
    cap_vmem = max(1, vmem_budget_bytes // max(per_graph, 1))
    cap = max(1, min(batch, cap_rows, cap_vmem))
    tb = 1
    for d in range(1, cap + 1):
        if batch % d == 0:
            tb = d
    return tb


def mpnn_forward(obs, params, n_obs_in):
    if obs.ndim == 2:
        obs = obs[None]
    obs = obs.astype(jnp.float32)
    B = obs.shape[0]
    V = obs.shape[-1]
    # The module's shape constraints imply #nodes == n_obs_in and obs rows == 2*n_obs_in.
    assert V == n_obs_in and obs.shape[1] == 2 * n_obs_in

    adj = obs[:, :n_obs_in]                              # (B, V, V)
    node_features = obs[:, n_obs_in:]                    # (B, V, n_obs_in)

    F = params["w_node_init"].shape[0]
    L = len(params["w_msg"])
    f32 = jnp.float32

    # Loop-invariant preamble hoisted to plain XLA.
    norm = jnp.sum(adj != 0, axis=1).astype(f32)
    norm = jnp.where(norm == 0, 1.0, norm)[..., None]                          # (B, V, 1)
    norm_pack = jnp.concatenate([1.0 / norm, norm / jnp.max(norm)], axis=-1)   # (B, V, 2)

    # Parameter prep: transpose for x @ W^T, split concat-consuming Linears, pad F-1 -> F.
    w_init_t = params["w_node_init"].T.astype(f32)                             # (n_obs, F)
    w_ee = params["w_edge_emb"].astype(f32)                                    # (F-1, n_obs+1)
    we_a = jnp.concatenate([w_ee[:, 0], jnp.zeros((1,), f32)]).reshape(1, F)
    we_n_t = jnp.concatenate([w_ee[:, 1:].T, jnp.zeros((n_obs_in, 1), f32)], axis=1)
    w_ef = params["w_edge_feat"].astype(f32)                                   # (F, F)
    w_ef1_t = jnp.concatenate([w_ef[:, :F - 1].T, jnp.zeros((1, F), f32)], axis=0)
    w_ef2 = w_ef[:, F - 1].reshape(1, F)
    w_ma = jnp.stack([w[:, :F].T for w in params["w_msg"]]).astype(f32)        # (L, F, F)
    w_me = jnp.stack([w[:, F:].T for w in params["w_msg"]]).astype(f32)
    w_uc = jnp.stack([w[:, :F].T for w in params["w_upd"]]).astype(f32)
    w_um = jnp.stack([w[:, F:].T for w in params["w_upd"]]).astype(f32)
    w_pool_t = params["w_pool"].T.astype(f32)                                  # (F, F)
    w_r = params["w_read"].reshape(2 * F).astype(f32)
    w_r_pool = w_r[:F].reshape(1, F)
    w_r_local = w_r[F:].reshape(1, F)
    b_r = params["b_read"].reshape(1, 1).astype(f32)

    TB = _pick_tb(B, V, n_obs_in, F)
    grid = (B // TB,)

    def full(shape):
        nd = len(shape)
        return pl.BlockSpec(shape, lambda i, _nd=nd: (0,) * _nd)

    out = pl.pallas_call(
        mpnn_kernel,
        out_shape=jax.ShapeDtypeStruct((B, 1, V), jnp.float32),
        grid=grid,
        in_specs=[
            pl.BlockSpec((TB, V, V), lambda i: (i, 0, 0)),          # adjacency block
            pl.BlockSpec((TB, V, n_obs_in), lambda i: (i, 0, 0)),   # node features block
            pl.BlockSpec((TB, V, 2), lambda i: (i, 0, 0)),          # [1/norm, norm/max]
            full((n_obs_in, F)), full((1, F)), full((n_obs_in, F)),
            full((F, F)), full((1, F)),
            full((L, F, F)), full((L, F, F)), full((L, F, F)), full((L, F, F)),
            full((F, F)), full((1, F)), full((1, F)), full((1, 1)),
        ],
        out_specs=pl.BlockSpec((TB, 1, V), lambda i: (i, 0, 0)),
        compiler_params=pltpu.CompilerParams(
            dimension_semantics=("parallel",)),   # independent batch blocks (2 TCs on v7x)
    )(adj, node_features, norm_pack,
      w_init_t, we_a, we_n_t, w_ef1_t, w_ef2,
      w_ma, w_me, w_uc, w_um,
      w_pool_t, w_r_pool, w_r_local, b_r)

    return jnp.squeeze(out)   # matches torch `out.squeeze()`


def mpnn_reference(obs, params, n_obs_in):
    """Pure-JAX transcription of the PyTorch MPNN forward, used for validation."""
    if obs.ndim == 2:
        obs = obs[None]
    obs = obs.astype(jnp.float32)
    adj = obs[:, :n_obs_in]
    nf = obs[:, n_obs_in:]
    B, V, _ = adj.shape
    relu = lambda z: jnp.maximum(z, 0.0)
    hp = jax.lax.Precision.HIGHEST

    norm = jnp.sum(adj != 0, axis=1).astype(jnp.float32)[..., None]
    norm = jnp.where(norm == 0, 1.0, norm)

    init = relu(jnp.einsum('bvn,fn->bvf', nf, params["w_node_init"], precision=hp))

    edge_feats = jnp.concatenate(
        [adj[..., None], jnp.broadcast_to(nf[:, None, :, :], (B, V, V, n_obs_in))], axis=-1)
    edge_feats = edge_feats * (adj[..., None] != 0).astype(jnp.float32)
    emb_unrolled = relu(jnp.einsum('bijc,fc->bijf', edge_feats,
                                   params["w_edge_emb"], precision=hp))
    emb = jnp.sum(emb_unrolled, axis=2) / norm
    edge_emb = relu(jnp.einsum('bvc,fc->bvf',
                               jnp.concatenate([emb, norm / jnp.max(norm)], axis=-1),
                               params["w_edge_feat"], precision=hp))

    mu = init
    for wm, wu in zip(params["w_msg"], params["w_upd"]):
        agg = jnp.einsum('bvu,buf->bvf', adj, mu, precision=hp) / norm
        msg = relu(jnp.einsum('bvc,fc->bvf',
                              jnp.concatenate([agg, edge_emb], axis=-1), wm, precision=hp))
        mu = relu(jnp.einsum('bvc,fc->bvf',
                             jnp.concatenate([mu, msg], axis=-1), wu, precision=hp))

    h_pooled = jnp.einsum('bf,gf->bg', jnp.sum(mu, axis=1) / V,
                          params["w_pool"], precision=hp)
    f_pooled = jnp.broadcast_to(h_pooled[:, None, :], mu.shape)
    feats = relu(jnp.concatenate([f_pooled, mu], axis=-1))
    out = jnp.einsum('bvc,oc->bvo', feats, params["w_read"], precision=hp) + params["b_read"]
    return jnp.squeeze(out)


if __name__ == "__main__":
    B = 2
    n_obs_in = 8            # this architecture implies n_nodes == n_obs_in
    V = n_obs_in
    F = 32                  # n_features
    n_layers = 3

    key = jax.random.PRNGKey(0)
    ks = list(jax.random.split(key, 16))

    def lin(k, shape):
        bound = 1.0 / np.sqrt(shape[-1])
        return jax.random.uniform(k, shape, jnp.float32, -bound, bound)

    params = {
        "w_node_init": lin(ks[0], (F, n_obs_in)),
        "w_edge_emb":  lin(ks[1], (F - 1, n_obs_in + 1)),
        "w_edge_feat": lin(ks[2], (F, F)),
        "w_msg":       [lin(ks[3 + i], (F, 2 * F)) for i in range(n_layers)],
        "w_upd":       [lin(ks[6 + i], (F, 2 * F)) for i in range(n_layers)],
        "w_pool":      lin(ks[9], (F, F)),
        "w_read":      lin(ks[10], (1, 2 * F)),
        "b_read":      lin(ks[11], (1,)),
    }

    # obs = [adjacency rows ; node-feature rows] along dim 1, shape (B, 2V, V).
    adj_raw = jax.random.normal(ks[12], (B, V, V), jnp.float32)
    adj_mask = (jax.random.uniform(ks[13], (B, V, V)) < 0.5).astype(jnp.float32)
    node_feats = jax.random.normal(ks[14], (B, V, n_obs_in), jnp.float32)
    obs = jnp.concatenate([adj_raw * adj_mask, node_feats], axis=1)

    fwd = jax.jit(mpnn_forward, static_argnums=(2,))
    out = jax.block_until_ready(fwd(obs, params, n_obs_in))
    ref = jax.block_until_ready(mpnn_reference(obs, params, n_obs_in))

    np.testing.assert_allclose(np.asarray(out), np.asarray(ref), rtol=5e-3, atol=5e-3)
    assert out.shape == (B, V)
    print("KERNEL_OK")
</pallas_src>

<mosaic_0001>
module attributes {stable_mosaic.version = 11 : i64} {
  func.func @mpnn_kernel(%arg0: i32, %arg1: memref<2x8x8xf32, #tpu.memory_space<vmem>>, %arg2: memref<2x8x8xf32, #tpu.memory_space<vmem>>, %arg3: memref<2x8x2xf32, #tpu.memory_space<vmem>>, %arg4: memref<8x32xf32, #tpu.memory_space<vmem>>, %arg5: memref<1x32xf32, #tpu.memory_space<vmem>>, %arg6: memref<8x32xf32, #tpu.memory_space<vmem>>, %arg7: memref<32x32xf32, #tpu.memory_space<vmem>>, %arg8: memref<1x32xf32, #tpu.memory_space<vmem>>, %arg9: memref<3x32x32xf32, #tpu.memory_space<vmem>>, %arg10: memref<3x32x32xf32, #tpu.memory_space<vmem>>, %arg11: memref<3x32x32xf32, #tpu.memory_space<vmem>>, %arg12: memref<3x32x32xf32, #tpu.memory_space<vmem>>, %arg13: memref<32x32xf32, #tpu.memory_space<vmem>>, %arg14: memref<1x32xf32, #tpu.memory_space<vmem>>, %arg15: memref<1x32xf32, #tpu.memory_space<vmem>>, %arg16: memref<1x1xf32, #tpu.memory_space<vmem>>, %arg17: memref<2x1x8xf32, #tpu.memory_space<vmem>>) attributes {dimension_semantics = [#tpu.dimension_semantics<parallel>], iteration_bounds = array<i64: 1>, scalar_prefetch = 0 : i64, scratch_operands = 0 : i64, tpu.core_type = #tpu.core_type<tc>, window_params = [{transform_indices = @transform_0, window_bounds = array<i64: 2, 8, 8>}, {transform_indices = @transform_1, window_bounds = array<i64: 2, 8, 8>}, {transform_indices = @transform_2, window_bounds = array<i64: 2, 8, 2>}, {pipeline_mode = #tpu.pipeline_mode<synchronous>, transform_indices = @transform_3, window_bounds = array<i64: 8, 32>}, {pipeline_mode = #tpu.pipeline_mode<synchronous>, transform_indices = @transform_4, window_bounds = array<i64: 1, 32>}, {pipeline_mode = #tpu.pipeline_mode<synchronous>, transform_indices = @transform_5, window_bounds = array<i64: 8, 32>}, {pipeline_mode = #tpu.pipeline_mode<synchronous>, transform_indices = @transform_6, window_bounds = array<i64: 32, 32>}, {pipeline_mode = #tpu.pipeline_mode<synchronous>, transform_indices = @transform_7, window_bounds = array<i64: 1, 32>}, {pipeline_mode = #tpu.pipeline_mode<synchronous>, transform_indices = @transform_8, window_bounds = array<i64: 3, 32, 32>}, {pipeline_mode = #tpu.pipeline_mode<synchronous>, transform_indices = @transform_9, window_bounds = array<i64: 3, 32, 32>}, {pipeline_mode = #tpu.pipeline_mode<synchronous>, transform_indices = @transform_10, window_bounds = array<i64: 3, 32, 32>}, {pipeline_mode = #tpu.pipeline_mode<synchronous>, transform_indices = @transform_11, window_bounds = array<i64: 3, 32, 32>}, {pipeline_mode = #tpu.pipeline_mode<synchronous>, transform_indices = @transform_12, window_bounds = array<i64: 32, 32>}, {pipeline_mode = #tpu.pipeline_mode<synchronous>, transform_indices = @transform_13, window_bounds = array<i64: 1, 32>}, {pipeline_mode = #tpu.pipeline_mode<synchronous>, transform_indices = @transform_14, window_bounds = array<i64: 1, 32>}, {pipeline_mode = #tpu.pipeline_mode<synchronous>, transform_indices = @transform_15, window_bounds = array<i64: 1, 1>}, {transform_indices = @transform_16, window_bounds = array<i64: 2, 1, 8>}]} {
    %c0 = arith.constant 0 : index
    %c0_0 = arith.constant 0 : index
    %c0_1 = arith.constant 0 : index
    %0 = vector.load %arg1[%c0, %c0_0, %c0_1] : memref<2x8x8xf32, #tpu.memory_space<vmem>>, vector<2x8x8xf32>
    %c0_2 = arith.constant 0 : index
    %c0_3 = arith.constant 0 : index
    %c0_4 = arith.constant 0 : index
    %1 = vector.load %arg2[%c0_2, %c0_3, %c0_4] : memref<2x8x8xf32, #tpu.memory_space<vmem>>, vector<2x8x8xf32>
    %c0_5 = arith.constant 0 : index
    %c0_6 = arith.constant 0 : index
    %c0_7 = arith.constant 0 : index
    %2 = vector.load %arg3[%c0_5, %c0_6, %c0_7] : memref<2x8x2xf32, #tpu.memory_space<vmem>>, vector<2x8x2xf32>
    %3 = vector.extract_strided_slice %2 {offsets = [0, 0, 0], sizes = [2, 8, 1], strides = [1, 1, 1]} : vector<2x8x2xf32> to vector<2x8x1xf32>
    %4 = vector.extract_strided_slice %2 {offsets = [0, 0, 1], sizes = [2, 8, 1], strides = [1, 1, 1]} : vector<2x8x2xf32> to vector<2x8x1xf32>
    %5 = vector.shape_cast %1 : vector<2x8x8xf32> to vector<16x8xf32>
    %c0_8 = arith.constant 0 : index
    %c0_9 = arith.constant 0 : index
    %6 = vector.load %arg4[%c0_8, %c0_9] : memref<8x32xf32, #tpu.memory_space<vmem>>, vector<8x32xf32>
    %cst = arith.constant dense<0.000000e+00> : vector<16x32xf32>
    %7 = tpu.matmul %5, %6, %cst {dimension_numbers = #tpu.dot_dimension_numbers<[1], [0], [0], [1], [0, 0, 1, 1], [], []>} : vector<16x8xf32>, vector<8x32xf32>, vector<16x32xf32> -> vector<16x32xf32>
    %cst_10 = arith.constant 0.000000e+00 : f32
    %8 = vector.broadcast %cst_10 : f32 to vector<16x32xf32>
    %9 = arith.maximumf %7, %8 : vector<16x32xf32>
    %c0_11 = arith.constant 0 : index
    %c0_12 = arith.constant 0 : index
    %10 = vector.load %arg6[%c0_11, %c0_12] : memref<8x32xf32, #tpu.memory_space<vmem>>, vector<8x32xf32>
    %cst_13 = arith.constant dense<0.000000e+00> : vector<16x32xf32>
    %11 = tpu.matmul %5, %10, %cst_13 {dimension_numbers = #tpu.dot_dimension_numbers<[1], [0], [0], [1], [0, 0, 1, 1], [], []>} : vector<16x8xf32>, vector<8x32xf32>, vector<16x32xf32> -> vector<16x32xf32>
    %12 = vector.shape_cast %11 : vector<16x32xf32> to vector<2x8x32xf32>
    %cst_14 = arith.constant 0.000000e+00 : f32
    %13 = vector.broadcast %cst_14 : f32 to vector<2x8x8xf32>
    %14 = arith.cmpf one, %0, %13 : vector<2x8x8xf32>
    %15 = arith.extui %14 : vector<2x8x8xi1> to vector<2x8x8xi32>
    %16 = arith.sitofp %15 : vector<2x8x8xi32> to vector<2x8x8xf32>
    %17 = vector.shape_cast %0 : vector<2x8x8xf32> to vector<2x8x8x1xf32>
    %c0_15 = arith.constant 0 : index
    %c0_16 = arith.constant 0 : index
    %18 = vector.load %arg5[%c0_15, %c0_16] : memref<1x32xf32, #tpu.memory_space<vmem>>, vector<1x32xf32>
    %19 = vector.shape_cast %18 : vector<1x32xf32> to vector<1x1x1x32xf32>
    %20 = vector.broadcast %17 : vector<2x8x8x1xf32> to vector<2x8x8x32xf32>
    %21 = vector.broadcast %19 : vector<1x1x1x32xf32> to vector<2x8x8x32xf32>
    %22 = arith.mulf %20, %21 : vector<2x8x8x32xf32>
    %23 = vector.shape_cast %12 : vector<2x8x32xf32> to vector<2x1x8x32xf32>
    %24 = vector.broadcast %23 : vector<2x1x8x32xf32> to vector<2x8x8x32xf32>
    %25 = arith.addf %22, %24 : vector<2x8x8x32xf32>
    %26 = vector.shape_cast %16 : vector<2x8x8xf32> to vector<2x8x8x1xf32>
    %cst_17 = arith.constant 0.000000e+00 : f32
    %27 = vector.broadcast %cst_17 : f32 to vector<2x8x8x32xf32>
    %28 = arith.maximumf %25, %27 : vector<2x8x8x32xf32>
    %29 = vector.broadcast %26 : vector<2x8x8x1xf32> to vector<2x8x8x32xf32>
    %30 = arith.mulf %29, %28 : vector<2x8x8x32xf32>
    %cst_18 = arith.constant dense<0.000000e+00> : vector<2x8x32xf32>
    %31 = vector.multi_reduction <add>, %30, %cst_18 [2] : vector<2x8x8x32xf32> to vector<2x8x32xf32>
    %32 = vector.broadcast %3 : vector<2x8x1xf32> to vector<2x8x32xf32>
    %33 = arith.mulf %31, %32 : vector<2x8x32xf32>
    %34 = vector.shape_cast %33 : vector<2x8x32xf32> to vector<16x32xf32>
    %c0_19 = arith.constant 0 : index
    %c0_20 = arith.constant 0 : index
    %35 = vector.load %arg7[%c0_19, %c0_20] : memref<32x32xf32, #tpu.memory_space<vmem>>, vector<32x32xf32>
    %cst_21 = arith.constant dense<0.000000e+00> : vector<16x32xf32>
    %36 = tpu.matmul %34, %35, %cst_21 {dimension_numbers = #tpu.dot_dimension_numbers<[1], [0], [0], [1], [0, 0, 1, 1], [], []>} : vector<16x32xf32>, vector<32x32xf32>, vector<16x32xf32> -> vector<16x32xf32>
    %c0_22 = arith.constant 0 : index
    %c0_23 = arith.constant 0 : index
    %37 = vector.load %arg8[%c0_22, %c0_23] : memref<1x32xf32, #tpu.memory_space<vmem>>, vector<1x32xf32>
    %38 = vector.shape_cast %37 : vector<1x32xf32> to vector<1x1x32xf32>
    %39 = vector.broadcast %4 : vector<2x8x1xf32> to vector<2x8x32xf32>
    %40 = vector.broadcast %38 : vector<1x1x32xf32> to vector<2x8x32xf32>
    %41 = arith.mulf %39, %40 : vector<2x8x32xf32>
    %42 = vector.shape_cast %41 : vector<2x8x32xf32> to vector<16x32xf32>
    %43 = arith.addf %36, %42 : vector<16x32xf32>
    %cst_24 = arith.constant 0.000000e+00 : f32
    %44 = vector.broadcast %cst_24 : f32 to vector<16x32xf32>
    %45 = arith.maximumf %43, %44 : vector<16x32xf32>
    %46 = vector.shape_cast %9 : vector<16x32xf32> to vector<2x8x32xf32>
    "tpu.trace_start"() <{level = 10 : i32, message = "bvu,buf->bvf"}> : () -> ()
    %cst_25 = arith.constant dense<0.000000e+00> : vector<2x8x32xf32>
    %47 = tpu.matmul %0, %46, %cst_25 {dimension_numbers = #tpu.dot_dimension_numbers<[2], [1], [1], [2], [0, 0, 0, 1, 1, 2], [0], [0]>} : vector<2x8x8xf32>, vector<2x8x32xf32>, vector<2x8x32xf32> -> vector<2x8x32xf32>
    "tpu.trace_stop"() : () -> ()
    %48 = vector.broadcast %3 : vector<2x8x1xf32> to vector<2x8x32xf32>
    %49 = arith.mulf %47, %48 : vector<2x8x32xf32>
    %50 = vector.shape_cast %49 : vector<2x8x32xf32> to vector<16x32xf32>
    %c0_26 = arith.constant 0 : index
    %c0_27 = arith.constant 0 : index
    %c0_28 = arith.constant 0 : index
    %51 = vector.load %arg9[%c0_26, %c0_27, %c0_28] : memref<3x32x32xf32, #tpu.memory_space<vmem>>, vector<1x32x32xf32>
    %52 = vector.shape_cast %51 : vector<1x32x32xf32> to vector<32x32xf32>
    %cst_29 = arith.constant dense<0.000000e+00> : vector<16x32xf32>
    %53 = tpu.matmul %50, %52, %cst_29 {dimension_numbers = #tpu.dot_dimension_numbers<[1], [0], [0], [1], [0, 0, 1, 1], [], []>} : vector<16x32xf32>, vector<32x32xf32>, vector<16x32xf32> -> vector<16x32xf32>
    %c0_30 = arith.constant 0 : index
    %c0_31 = arith.constant 0 : index
    %c0_32 = arith.constant 0 : index
    %54 = vector.load %arg10[%c0_30, %c0_31, %c0_32] : memref<3x32x32xf32, #tpu.memory_space<vmem>>, vector<1x32x32xf32>
    %55 = vector.shape_cast %54 : vector<1x32x32xf32> to vector<32x32xf32>
    %cst_33 = arith.constant dense<0.000000e+00> : vector<16x32xf32>
    %56 = tpu.matmul %45, %55, %cst_33 {dimension_numbers = #tpu.dot_dimension_numbers<[1], [0], [0], [1], [0, 0, 1, 1], [], []>} : vector<16x32xf32>, vector<32x32xf32>, vector<16x32xf32> -> vector<16x32xf32>
    %57 = arith.addf %53, %56 : vector<16x32xf32>
    %cst_34 = arith.constant 0.000000e+00 : f32
    %58 = vector.broadcast %cst_34 : f32 to vector<16x32xf32>
    %59 = arith.maximumf %57, %58 : vector<16x32xf32>
    %c0_35 = arith.constant 0 : index
    %c0_36 = arith.constant 0 : index
    %c0_37 = arith.constant 0 : index
    %60 = vector.load %arg11[%c0_35, %c0_36, %c0_37] : memref<3x32x32xf32, #tpu.memory_space<vmem>>, vector<1x32x32xf32>
    %61 = vector.shape_cast %60 : vector<1x32x32xf32> to vector<32x32xf32>
    %cst_38 = arith.constant dense<0.000000e+00> : vector<16x32xf32>
    %62 = tpu.matmul %9, %61, %cst_38 {dimension_numbers = #tpu.dot_dimension_numbers<[1], [0], [0], [1], [0, 0, 1, 1], [], []>} : vector<16x32xf32>, vector<32x32xf32>, vector<16x32xf32> -> vector<16x32xf32>
    %c0_39 = arith.constant 0 : index
    %c0_40 = arith.constant 0 : index
    %c0_41 = arith.constant 0 : index
    %63 = vector.load %arg12[%c0_39, %c0_40, %c0_41] : memref<3x32x32xf32, #tpu.memory_space<vmem>>, vector<1x32x32xf32>
    %64 = vector.shape_cast %63 : vector<1x32x32xf32> to vector<32x32xf32>
    %cst_42 = arith.constant dense<0.000000e+00> : vector<16x32xf32>
    %65 = tpu.matmul %59, %64, %cst_42 {dimension_numbers = #tpu.dot_dimension_numbers<[1], [0], [0], [1], [0, 0, 1, 1], [], []>} : vector<16x32xf32>, vector<32x32xf32>, vector<16x32xf32> -> vector<16x32xf32>
    %66 = arith.addf %62, %65 : vector<16x32xf32>
    %cst_43 = arith.constant 0.000000e+00 : f32
    %67 = vector.broadcast %cst_43 : f32 to vector<16x32xf32>
    %68 = arith.maximumf %66, %67 : vector<16x32xf32>
    %69 = vector.shape_cast %68 : vector<16x32xf32> to vector<2x8x32xf32>
    "tpu.trace_start"() <{level = 10 : i32, message = "bvu,buf->bvf"}> : () -> ()
    %cst_44 = arith.constant dense<0.000000e+00> : vector<2x8x32xf32>
    %70 = tpu.matmul %0, %69, %cst_44 {dimension_numbers = #tpu.dot_dimension_numbers<[2], [1], [1], [2], [0, 0, 0, 1, 1, 2], [0], [0]>} : vector<2x8x8xf32>, vector<2x8x32xf32>, vector<2x8x32xf32> -> vector<2x8x32xf32>
    "tpu.trace_stop"() : () -> ()
    %71 = vector.broadcast %3 : vector<2x8x1xf32> to vector<2x8x32xf32>
    %72 = arith.mulf %70, %71 : vector<2x8x32xf32>
    %73 = vector.shape_cast %72 : vector<2x8x32xf32> to vector<16x32xf32>
    %c1 = arith.constant 1 : index
    %c0_45 = arith.constant 0 : index
    %c0_46 = arith.constant 0 : index
    %74 = vector.load %arg9[%c1, %c0_45, %c0_46] : memref<3x32x32xf32, #tpu.memory_space<vmem>>, vector<1x32x32xf32>
    %75 = vector.shape_cast %74 : vector<1x32x32xf32> to vector<32x32xf32>
    %cst_47 = arith.constant dense<0.000000e+00> : vector<16x32xf32>
    %76 = tpu.matmul %73, %75, %cst_47 {dimension_numbers = #tpu.dot_dimension_numbers<[1], [0], [0], [1], [0, 0, 1, 1], [], []>} : vector<16x32xf32>, vector<32x32xf32>, vector<16x32xf32> -> vector<16x32xf32>
    %c1_48 = arith.constant 1 : index
    %c0_49 = arith.constant 0 : index
    %c0_50 = arith.constant 0 : index
    %77 = vector.load %arg10[%c1_48, %c0_49, %c0_50] : memref<3x32x32xf32, #tpu.memory_space<vmem>>, vector<1x32x32xf32>
    %78 = vector.shape_cast %77 : vector<1x32x32xf32> to vector<32x32xf32>
    %cst_51 = arith.constant dense<0.000000e+00> : vector<16x32xf32>
    %79 = tpu.matmul %45, %78, %cst_51 {dimension_numbers = #tpu.dot_dimension_numbers<[1], [0], [0], [1], [0, 0, 1, 1], [], []>} : vector<16x32xf32>, vector<32x32xf32>, vector<16x32xf32> -> vector<16x32xf32>
    %80 = arith.addf %76, %79 : vector<16x32xf32>
    %cst_52 = arith.constant 0.000000e+00 : f32
    %81 = vector.broadcast %cst_52 : f32 to vector<16x32xf32>
    %82 = arith.maximumf %80, %81 : vector<16x32xf32>
    %c1_53 = arith.constant 1 : index
    %c0_54 = arith.constant 0 : index
    %c0_55 = arith.constant 0 : index
    %83 = vector.load %arg11[%c1_53, %c0_54, %c0_55] : memref<3x32x32xf32, #tpu.memory_space<vmem>>, vector<1x32x32xf32>
    %84 = vector.shape_cast %83 : vector<1x32x32xf32> to vector<32x32xf32>
    %cst_56 = arith.constant dense<0.000000e+00> : vector<16x32xf32>
    %85 = tpu.matmul %68, %84, %cst_56 {dimension_numbers = #tpu.dot_dimension_numbers<[1], [0], [0], [1], [0, 0, 1, 1], [], []>} : vector<16x32xf32>, vector<32x32xf32>, vector<16x32xf32> -> vector<16x32xf32>
    %c1_57 = arith.constant 1 : index
    %c0_58 = arith.constant 0 : index
    %c0_59 = arith.constant 0 : index
    %86 = vector.load %arg12[%c1_57, %c0_58, %c0_59] : memref<3x32x32xf32, #tpu.memory_space<vmem>>, vector<1x32x32xf32>
    %87 = vector.shape_cast %86 : vector<1x32x32xf32> to vector<32x32xf32>
    %cst_60 = arith.constant dense<0.000000e+00> : vector<16x32xf32>
    %88 = tpu.matmul %82, %87, %cst_60 {dimension_numbers = #tpu.dot_dimension_numbers<[1], [0], [0], [1], [0, 0, 1, 1], [], []>} : vector<16x32xf32>, vector<32x32xf32>, vector<16x32xf32> -> vector<16x32xf32>
    %89 = arith.addf %85, %88 : vector<16x32xf32>
    %cst_61 = arith.constant 0.000000e+00 : f32
    %90 = vector.broadcast %cst_61 : f32 to vector<16x32xf32>
    %91 = arith.maximumf %89, %90 : vector<16x32xf32>
    %92 = vector.shape_cast %91 : vector<16x32xf32> to vector<2x8x32xf32>
    "tpu.trace_start"() <{level = 10 : i32, message = "bvu,buf->bvf"}> : () -> ()
    %cst_62 = arith.constant dense<0.000000e+00> : vector<2x8x32xf32>
    %93 = tpu.matmul %0, %92, %cst_62 {dimension_numbers = #tpu.dot_dimension_numbers<[2], [1], [1], [2], [0, 0, 0, 1, 1, 2], [0], [0]>} : vector<2x8x8xf32>, vector<2x8x32xf32>, vector<2x8x32xf32> -> vector<2x8x32xf32>
    "tpu.trace_stop"() : () -> ()
    %94 = vector.broadcast %3 : vector<2x8x1xf32> to vector<2x8x32xf32>
    %95 = arith.mulf %93, %94 : vector<2x8x32xf32>
    %96 = vector.shape_cast %95 : vector<2x8x32xf32> to vector<16x32xf32>
    %c2 = arith.constant 2 : index
    %c0_63 = arith.constant 0 : index
    %c0_64 = arith.constant 0 : index
    %97 = vector.load %arg9[%c2, %c0_63, %c0_64] : memref<3x32x32xf32, #tpu.memory_space<vmem>>, vector<1x32x32xf32>
    %98 = vector.shape_cast %97 : vector<1x32x32xf32> to vector<32x32xf32>
    %cst_65 = arith.constant dense<0.000000e+00> : vector<16x32xf32>
    %99 = tpu.matmul %96, %98, %cst_65 {dimension_numbers = #tpu.dot_dimension_numbers<[1], [0], [0], [1], [0, 0, 1, 1], [], []>} : vector<16x32xf32>, vector<32x32xf32>, vector<16x32xf32> -> vector<16x32xf32>
    %c2_66 = arith.constant 2 : index
    %c0_67 = arith.constant 0 : index
    %c0_68 = arith.constant 0 : index
    %100 = vector.load %arg10[%c2_66, %c0_67, %c0_68] : memref<3x32x32xf32, #tpu.memory_space<vmem>>, vector<1x32x32xf32>
    %101 = vector.shape_cast %100 : vector<1x32x32xf32> to vector<32x32xf32>
    %cst_69 = arith.constant dense<0.000000e+00> : vector<16x32xf32>
    %102 = tpu.matmul %45, %101, %cst_69 {dimension_numbers = #tpu.dot_dimension_numbers<[1], [0], [0], [1], [0, 0, 1, 1], [], []>} : vector<16x32xf32>, vector<32x32xf32>, vector<16x32xf32> -> vector<16x32xf32>
    %103 = arith.addf %99, %102 : vector<16x32xf32>
    %cst_70 = arith.constant 0.000000e+00 : f32
    %104 = vector.broadcast %cst_70 : f32 to vector<16x32xf32>
    %105 = arith.maximumf %103, %104 : vector<16x32xf32>
    %c2_71 = arith.constant 2 : index
    %c0_72 = arith.constant 0 : index
    %c0_73 = arith.constant 0 : index
    %106 = vector.load %arg11[%c2_71, %c0_72, %c0_73] : memref<3x32x32xf32, #tpu.memory_space<vmem>>, vector<1x32x32xf32>
    %107 = vector.shape_cast %106 : vector<1x32x32xf32> to vector<32x32xf32>
    %cst_74 = arith.constant dense<0.000000e+00> : vector<16x32xf32>
    %108 = tpu.matmul %91, %107, %cst_74 {dimension_numbers = #tpu.dot_dimension_numbers<[1], [0], [0], [1], [0, 0, 1, 1], [], []>} : vector<16x32xf32>, vector<32x32xf32>, vector<16x32xf32> -> vector<16x32xf32>
    %c2_75 = arith.constant 2 : index
    %c0_76 = arith.constant 0 : index
    %c0_77 = arith.constant 0 : index
    %109 = vector.load %arg12[%c2_75, %c0_76, %c0_77] : memref<3x32x32xf32, #tpu.memory_space<vmem>>, vector<1x32x32xf32>
    %110 = vector.shape_cast %109 : vector<1x32x32xf32> to vector<32x32xf32>
    %cst_78 = arith.constant dense<0.000000e+00> : vector<16x32xf32>
    %111 = tpu.matmul %105, %110, %cst_78 {dimension_numbers = #tpu.dot_dimension_numbers<[1], [0], [0], [1], [0, 0, 1, 1], [], []>} : vector<16x32xf32>, vector<32x32xf32>, vector<16x32xf32> -> vector<16x32xf32>
    %112 = arith.addf %108, %111 : vector<16x32xf32>
    %cst_79 = arith.constant 0.000000e+00 : f32
    %113 = vector.broadcast %cst_79 : f32 to vector<16x32xf32>
    %114 = arith.maximumf %112, %113 : vector<16x32xf32>
    %115 = vector.shape_cast %114 : vector<16x32xf32> to vector<2x8x32xf32>
    %cst_80 = arith.constant dense<0.000000e+00> : vector<2x32xf32>
    %116 = vector.multi_reduction <add>, %115, %cst_80 [1] : vector<2x8x32xf32> to vector<2x32xf32>
    %cst_81 = arith.constant 1.250000e-01 : f32
    %117 = vector.broadcast %cst_81 : f32 to vector<2x32xf32>
    %118 = arith.mulf %116, %117 : vector<2x32xf32>
    %c0_82 = arith.constant 0 : index
    %c0_83 = arith.constant 0 : index
    %119 = vector.load %arg13[%c0_82, %c0_83] : memref<32x32xf32, #tpu.memory_space<vmem>>, vector<32x32xf32>
    %cst_84 = arith.constant dense<0.000000e+00> : vector<2x32xf32>
    %120 = tpu.matmul %118, %119, %cst_84 {dimension_numbers = #tpu.dot_dimension_numbers<[1], [0], [0], [1], [0, 0, 1, 1], [], []>} : vector<2x32xf32>, vector<32x32xf32>, vector<2x32xf32> -> vector<2x32xf32>
    %cst_85 = arith.constant 0.000000e+00 : f32
    %121 = vector.broadcast %cst_85 : f32 to vector<2x32xf32>
    %122 = arith.maximumf %120, %121 : vector<2x32xf32>
    %c0_86 = arith.constant 0 : index
    %c0_87 = arith.constant 0 : index
    %123 = vector.load %arg14[%c0_86, %c0_87] : memref<1x32xf32, #tpu.memory_space<vmem>>, vector<1x32xf32>
    %124 = vector.broadcast %123 : vector<1x32xf32> to vector<2x32xf32>
    %125 = arith.mulf %122, %124 : vector<2x32xf32>
    %cst_88 = arith.constant dense<0.000000e+00> : vector<2xf32>
    %126 = vector.multi_reduction <add>, %125, %cst_88 [1] : vector<2x32xf32> to vector<2xf32>
    %127 = vector.shape_cast %126 : vector<2xf32> to vector<2x1xf32>
    %cst_89 = arith.constant 0.000000e+00 : f32
    %128 = vector.broadcast %cst_89 : f32 to vector<2x8x32xf32>
    %129 = arith.maximumf %115, %128 : vector<2x8x32xf32>
    %c0_90 = arith.constant 0 : index
    %c0_91 = arith.constant 0 : index
    %130 = vector.load %arg15[%c0_90, %c0_91] : memref<1x32xf32, #tpu.memory_space<vmem>>, vector<1x32xf32>
    %131 = vector.shape_cast %130 : vector<1x32xf32> to vector<1x1x32xf32>
    %132 = vector.broadcast %131 : vector<1x1x32xf32> to vector<2x8x32xf32>
    %133 = arith.mulf %129, %132 : vector<2x8x32xf32>
    %cst_92 = arith.constant dense<0.000000e+00> : vector<2x8xf32>
    %134 = vector.multi_reduction <add>, %133, %cst_92 [2] : vector<2x8x32xf32> to vector<2x8xf32>
    %135 = vector.broadcast %127 : vector<2x1xf32> to vector<2x8xf32>
    %136 = arith.addf %134, %135 : vector<2x8xf32>
    %c0_93 = arith.constant 0 : index
    %c0_94 = arith.constant 0 : index
    %137 = vector.load %arg16[%c0_93, %c0_94] : memref<1x1xf32, #tpu.memory_space<vmem>>, vector<1x1xf32>
    %138 = vector.broadcast %137 : vector<1x1xf32> to vector<2x8xf32>
    %139 = arith.addf %136, %138 : vector<2x8xf32>
    %140 = vector.shape_cast %139 : vector<2x8xf32> to vector<2x1x8xf32>
    %c0_95 = arith.constant 0 : index
    %c0_96 = arith.constant 0 : index
    %c0_97 = arith.constant 0 : index
    %141 = vector.load %arg17[%c0_95, %c0_96, %c0_97] : memref<2x1x8xf32, #tpu.memory_space<vmem>>, vector<2x1x8xf32>
    tpu.vector_store %arg17[%c0_95, %c0_96, %c0_97], %140 {strides = array<i32>} : memref<2x1x8xf32, #tpu.memory_space<vmem>>, vector<2x1x8xf32>,
    return
  }
  func.func @transform_0(%arg0: i32) -> (i32, i32, i32) {
    %c0_i32 = arith.constant 0 : i32
    %c0_i32_0 = arith.constant 0 : i32
    %c0_i32_1 = arith.constant 0 : i32
    return %arg0, %c0_i32, %c0_i32_0 : i32, i32, i32
  }
  func.func @transform_1(%arg0: i32) -> (i32, i32, i32) {
    %c0_i32 = arith.constant 0 : i32
    %c0_i32_0 = arith.constant 0 : i32
    %c0_i32_1 = arith.constant 0 : i32
    return %arg0, %c0_i32, %c0_i32_0 : i32, i32, i32
  }
  func.func @transform_2(%arg0: i32) -> (i32, i32, i32) {
    %c0_i32 = arith.constant 0 : i32
    %c0_i32_0 = arith.constant 0 : i32
    %c0_i32_1 = arith.constant 0 : i32
    return %arg0, %c0_i32, %c0_i32_0 : i32, i32, i32
  }
  func.func @transform_3(%arg0: i32) -> (i32, i32) {
    %c0_i32 = arith.constant 0 : i32
    %c0_i32_0 = arith.constant 0 : i32
    %c0_i32_1 = arith.constant 0 : i32
    return %c0_i32, %c0_i32_0 : i32, i32
  }
  func.func @transform_4(%arg0: i32) -> (i32, i32) {
    %c0_i32 = arith.constant 0 : i32
    %c0_i32_0 = arith.constant 0 : i32
    %c0_i32_1 = arith.constant 0 : i32
    return %c0_i32, %c0_i32_0 : i32, i32
  }
  func.func @transform_5(%arg0: i32) -> (i32, i32) {
    %c0_i32 = arith.constant 0 : i32
    %c0_i32_0 = arith.constant 0 : i32
    %c0_i32_1 = arith.constant 0 : i32
    return %c0_i32, %c0_i32_0 : i32, i32
  }
  func.func @transform_6(%arg0: i32) -> (i32, i32) {
    %c0_i32 = arith.constant 0 : i32
    %c0_i32_0 = arith.constant 0 : i32
    %c0_i32_1 = arith.constant 0 : i32
    return %c0_i32, %c0_i32_0 : i32, i32
  }
  func.func @transform_7(%arg0: i32) -> (i32, i32) {
    %c0_i32 = arith.constant 0 : i32
    %c0_i32_0 = arith.constant 0 : i32
    %c0_i32_1 = arith.constant 0 : i32
    return %c0_i32, %c0_i32_0 : i32, i32
  }
  func.func @transform_8(%arg0: i32) -> (i32, i32, i32) {
    %c0_i32 = arith.constant 0 : i32
    %c0_i32_0 = arith.constant 0 : i32
    %c0_i32_1 = arith.constant 0 : i32
    %c0_i32_2 = arith.constant 0 : i32
    return %c0_i32, %c0_i32_0, %c0_i32_1 : i32, i32, i32
  }
  func.func @transform_9(%arg0: i32) -> (i32, i32, i32) {
    %c0_i32 = arith.constant 0 : i32
    %c0_i32_0 = arith.constant 0 : i32
    %c0_i32_1 = arith.constant 0 : i32
    %c0_i32_2 = arith.constant 0 : i32
    return %c0_i32, %c0_i32_0, %c0_i32_1 : i32, i32, i32
  }
  func.func @transform_10(%arg0: i32) -> (i32, i32, i32) {
    %c0_i32 = arith.constant 0 : i32
    %c0_i32_0 = arith.constant 0 : i32
    %c0_i32_1 = arith.constant 0 : i32
    %c0_i32_2 = arith.constant 0 : i32
    return %c0_i32, %c0_i32_0, %c0_i32_1 : i32, i32, i32
  }
  func.func @transform_11(%arg0: i32) -> (i32, i32, i32) {
    %c0_i32 = arith.constant 0 : i32
    %c0_i32_0 = arith.constant 0 : i32
    %c0_i32_1 = arith.constant 0 : i32
    %c0_i32_2 = arith.constant 0 : i32
    return %c0_i32, %c0_i32_0, %c0_i32_1 : i32, i32, i32
  }
  func.func @transform_12(%arg0: i32) -> (i32, i32) {
    %c0_i32 = arith.constant 0 : i32
    %c0_i32_0 = arith.constant 0 : i32
    %c0_i32_1 = arith.constant 0 : i32
    return %c0_i32, %c0_i32_0 : i32, i32
  }
  func.func @transform_13(%arg0: i32) -> (i32, i32) {
    %c0_i32 = arith.constant 0 : i32
    %c0_i32_0 = arith.constant 0 : i32
    %c0_i32_1 = arith.constant 0 : i32
    return %c0_i32, %c0_i32_0 : i32, i32
  }
  func.func @transform_14(%arg0: i32) -> (i32, i32) {
    %c0_i32 = arith.constant 0 : i32
    %c0_i32_0 = arith.constant 0 : i32
    %c0_i32_1 = arith.constant 0 : i32
    return %c0_i32, %c0_i32_0 : i32, i32
  }
  func.func @transform_15(%arg0: i32) -> (i32, i32) {
    %c0_i32 = arith.constant 0 : i32
    %c0_i32_0 = arith.constant 0 : i32
    %c0_i32_1 = arith.constant 0 : i32
    return %c0_i32, %c0_i32_0 : i32, i32
  }
  func.func @transform_16(%arg0: i32) -> (i32, i32, i32) {
    %c0_i32 = arith.constant 0 : i32
    %c0_i32_0 = arith.constant 0 : i32
    %c0_i32_1 = arith.constant 0 : i32
    return %arg0, %c0_i32, %c0_i32_0 : i32, i32, i32
  }
}

</mosaic_0001>

<bundles_post_ra>
// kernel: mpnn_forward.1
= control target key start
LH: loop header
LB: loop body
LE: loop exit
PB: predicated region body
PF: predicated region fallthrough
CT: control target
= control target key end

     0   :  { %s3519_s0 = inlined_call_operand.vmem [shape: f32[2,8,8], index: 0, kind: input, shape index: {}]   ;;  %s3520_s1 = inlined_call_operand.vmem [shape: f32[2,8,8], index: 1, kind: input, shape index: {}]   ;;  %s3521_s2 = inlined_call_operand.vmem [shape: f32[2,8,2], index: 2, kind: input, shape index: {}]   ;;  %s3522_s3 = inlined_call_operand.vmem [shape: f32[8,32], index: 3, kind: input, shape index: {}]   ;;  %s3523_s4 = inlined_call_operand.vmem [shape: f32[1,32], index: 4, kind: input, shape index: {}]   ;;  %s3524_s5 = inlined_call_operand.vmem [shape: f32[8,32], index: 5, kind: input, shape index: {}]   ;;  %s3525_s6 = inlined_call_operand.vmem [shape: f32[32,32], index: 6, kind: input, shape index: {}]   ;;  %s3526_s7 = inlined_call_operand.vmem [shape: f32[1,32], index: 7, kind: input, shape index: {}]   ;;  %s3527_s8 = inlined_call_operand.vmem [shape: f32[3,32,32], index: 8, kind: input, shape index: {}]   ;;  %s3528_s9 = inlined_call_operand.vmem [shape: f32[3,32,32], index: 9, kind: input, shape index: {}]   ;;  %s3529_s10 = inlined_call_operand.vmem [shape: f32[3,32,32], index: 10, kind: input, shape index: {}]   ;;  %s3530_s11 = inlined_call_operand.vmem [shape: f32[3,32,32], index: 11, kind: input, shape index: {}]   ;;  %s3531_s12 = inlined_call_operand.vmem [shape: f32[32,32], index: 12, kind: input, shape index: {}]   ;;  %s3532_s13 = inlined_call_operand.vmem [shape: f32[1,32], index: 13, kind: input, shape index: {}]   ;;  %s3533_s14 = inlined_call_operand.vmem [shape: f32[1,32], index: 14, kind: input, shape index: {}]   ;;  %s3534_s15 = inlined_call_operand.<no memory space> [shape: f32[1,1], index: 15, kind: input, shape index: {}]   ;;  %s3535_s16 = inlined_call_operand.hbm [shape: f32[2,1,8], index: 16, kind: output, shape index: {}]  }
   0x1   :  { %3537 = sst [smem:[#allocation6_spill]] %s3519_s0  ;;  %v21_v0 = vstv %s3534_s15 }
   0x2   :  { %22 = vst [vmem:[#allocation2] sm:$0x1] %v21_v0 }
   0x3   :  { %v62_v1 = vld [vmem:[%s3522_s3] sm:$0xff]  ;;  %vm63_vm0 = vcmask 64512   ;;  %v229_v4 = vlaneseq  ;;  %v59_v5 = vld [vmem:[%s3520_s1 + $0x8] sm:$0xff]  ;;  %s3538_s15 = sld [smem:[#allocation6_spill]] }
   0x4   :  { %v147_v2 = vld [vmem:[%s3524_s5] sm:$0xff]  ;;  %2670 = vmatprep.subr.mxu0 %v62_v1 }
   0x5   :  { %v58_v3 = vld [vmem:[%s3520_s1] sm:$0xff]  ;;  %2675 = vmatprep.subr.mxu1 %v147_v2  ;;  %2671 = vmatpush3.msra.mxu0 %v62_v1  ;;  %v3010_v6 = vshrl.u32 %v229_v4, 7 }
   0x6   :  { %2672 = vmatprep.mubr.msk.f32.mxu0 %vm63_vm0, %v58_v3  ;;  %2676 = vmatpush3.msra.mxu1 %v147_v2 }
   0x7   :  { %2677 = vmatprep.mubr.msk.f32.mxu1 %vm63_vm0, %v58_v3 }
   0x9   :  { %v3016_v7 = vld [vmem:[%s3538_s15 + $0x8] sm:$0xff]  ;;  %v3021_v8 = vld [vmem:[%s3538_s15] sm:$0xff] }
   0xa   :  { %23 = vsyncpa [#allocation4], 0  ;;  %2673 = vmatmul.mubr.msk.f32.vlgmr.msra.gmra.mxu0 %vm63_vm0, %v59_v5  ;;  %2678 = vmatmul.mubr.msk.f32.vlgmr.msra.gmra.mxu1 %vm63_vm0, %v59_v5  ;;  %v3026_v9 = vsub.s32 1, %v3010_v6  ;;  %v245_v10 = vsub.s32 2, %v3010_v6  ;;  %v3030_v11 = vsub.s32 0, %v3010_v6  ;;  %v2901_v12 = vmov 0  }
   0xb   :  { %2872 = vset.pattern.permute.xlu1 %v2901_v12  ;;  %2871 = vset.pattern.permute.xlu0 %v2901_v12  ;;  %v2902_v15 = vmov 0.0   ;;  %v252_v18 = vsub.s32 3, %v3010_v6  ;;  %v259_v21 = vsub.s32 4, %v3010_v6  ;;  %v266_v24 = vsub.s32 5, %v3010_v6  ;;  %v61_v53 = vld [vmem:[%s3521_s2 + $0x8] sm:$0xff]  ;;  %v60_v54 = vld [vmem:[%s3521_s2] sm:$0xff] }
   0xc   :  { %v295_v13 = vrot.slane %v3016_v7, %v3026_v9  ;;  %v239_v14 = vrot.slane %v3021_v8, %v3026_v9  ;;  %2691 = vmatprep.subr.mxu1 %v2902_v15  ;;  %v246_v16 = vrot.slane %v3021_v8, %v245_v10  ;;  %v232_v17 = vrot.slane %v3021_v8, %v3030_v11  ;;  %v694_v55 = vld [vmem:[%s3525_s6 + $0x18] sm:$0xff]  ;;  %v693_v56 = vld [vmem:[%s3525_s6 + $0x10] sm:$0xff]  ;;  %v692_v57 = vld [vmem:[%s3525_s6 + $0x8] sm:$0xff] }
   0xd   :  { %v253_v19 = vrot.slane %v3021_v8, %v252_v18  ;;  %v302_v20 = vrot.slane %v3016_v7, %v245_v10  ;;  %v260_v22 = vrot.slane %v3021_v8, %v259_v21  ;;  %v288_v23 = vrot.slane %v3016_v7, %v3030_v11  ;;  %2680 = vmatprep.subr.mxu0 %v694_v55  ;;  %v691_v58 = vld [vmem:[%s3525_s6] sm:$0xff] }
   0xe   :  { %297 = vbcast.lane.b32.xlu1 %v295_v13, 256  ;;  %241 = vbcast.lane.b32.xlu0 %v239_v14, 256  ;;  %v309_v25 = vrot.slane %v3016_v7, %v252_v18  ;;  %v267_v26 = vrot.slane %v3021_v8, %v266_v24  ;;  %v273_v27 = vsub.s32 6, %v3010_v6  ;;  %v316_v28 = vrot.slane %v3016_v7, %v259_v21 }
   0xf   :  { %v280_v30 = vsub.s32 7, %v3010_v6  ;;  %vm223_vm1 = vcmp.ne.f32.partialorder %v3021_v8, 0.0  ;;  %v323_v31 = vrot.slane %v3016_v7, %v266_v24  ;;  %vm224_vm2 = vcmp.ne.f32.partialorder %v3016_v7, 0.0  ;;  %2681 = vmatpush3.msra.mxu0 %v694_v55 }
  0x10   :  { %v274_v29 = vrot.slane %v3021_v8, %v273_v27  ;;  %v2497_v33 = vsel %vm223_vm1, 1.0, %v2902_v15  ;;  %v330_v34 = vrot.slane %v3016_v7, %v273_v27  ;;  %v2498_v38 = vsel %vm224_vm2, 1.0, %v2902_v15  ;;  %2682 = vmatprep.subr.mxu0 %v693_v56 }
  0x11   :  { %v281_v32 = vrot.slane %v3021_v8, %v280_v30  ;;  %v390_v35 = vrot.slane %v2497_v33, %v3026_v9  ;;  %v337_v36 = vrot.slane %v3016_v7, %v280_v30  ;;  %v397_v37 = vrot.slane %v2497_v33, %v245_v10  ;;  %2683 = vmatpush3.msra.mxu0 %v693_v56 }
  0x12   :  { %248 = vbcast.lane.b32.xlu0 %v246_v16, 256  ;;  %234 = vbcast.lane.b32.xlu1 %v232_v17, 256  ;;  %v446_v39 = vrot.slane %v2498_v38, %v3026_v9  ;;  %v383_v40 = vrot.slane %v2497_v33, %v3030_v11  ;;  %v404_v41 = vrot.slane %v2497_v33, %v252_v18  ;;  %vm2903_vm3 = vmmov 0  }
  0x13   :  { %v453_v42 = vrot.slane %v2498_v38, %v245_v10  ;;  %v411_v43 = vrot.slane %v2497_v33, %v259_v21  ;;  %v439_v44 = vrot.slane %v2498_v38, %v3030_v11  ;;  %v460_v45 = vrot.slane %v2498_v38, %v252_v18  ;;  %2693 = vmatprep.mubr.msk.f32.mxu1 %vm2903_vm3, %v2902_v15 }
  0x14   :  { %v418_v46 = vrot.slane %v2497_v33, %v266_v24  ;;  %v467_v47 = vrot.slane %v2498_v38, %v259_v21  ;;  %v425_v48 = vrot.slane %v2497_v33, %v273_v27  ;;  %v474_v49 = vrot.slane %v2498_v38, %v266_v24  ;;  %2684 = vmatprep.subr.mxu0 %v692_v57 }
  0x15   :  { %v432_v50 = vrot.slane %v2497_v33, %v280_v30  ;;  %v481_v51 = vrot.slane %v2498_v38, %v273_v27  ;;  %v488_v52 = vrot.slane %v2498_v38, %v280_v30  ;;  %2685 = vmatpush3.msra.mxu0 %v692_v57  ;;  %v2904_v0 = vmov 1  }
  0x16   :  { %255 = vbcast.lane.b32.xlu0 %v253_v19, 256  ;;  %304 = vbcast.lane.b32.xlu1 %v302_v20, 256  ;;  %vm524_vm4 = vcmask 261120   ;;  %vm729_vm5 = vcmask 1041409   ;;  %vm732_vm6 = vcmask 1042434   ;;  %vm735_vm7 = vcmask 1043459  }
  0x17   :  { %2686 = vmatprep.subr.mxu0 %v691_v58  ;;  %vm738_vm8 = vcmask 1044484   ;;  %vm741_vm9 = vcmask 1045509   ;;  %vm744_vm10 = vcmask 1046534   ;;  %vm747_vm11 = vcmask 1047559  }
  0x18   :  { %2687 = vmatpush3.msra.mxu0 %v691_v58  ;;  %vm2408_vm12 = vcmask 254976   ;;  %vm2474_vm13 = vcmask 57344  }
  0x1a   :  { %262 = vbcast.lane.b32.xlu0 %v260_v22, 256  ;;  %290 = vbcast.lane.b32.xlu1 %v288_v23, 256 }
  0x1e   :  { %311 = vbcast.lane.b32.xlu0 %v309_v25, 256  ;;  %269 = vbcast.lane.b32.xlu1 %v267_v26, 256 }
  0x22   :  { %318 = vbcast.lane.b32.xlu0 %v316_v28, 256  ;;  %276 = vbcast.lane.b32.xlu1 %v274_v29, 256  ;;  %v2499_v29 = vld [vmem:[%s3523_s4] ss:$0 sm:$0xff] }
  0x26   :  { %325 = vbcast.lane.b32.xlu0 %v323_v31, 256  ;;  %283 = vbcast.lane.b32.xlu1 %v281_v32, 256 }
  0x2a   :  { %332 = vbcast.lane.b32.xlu0 %v330_v34, 256  ;;  %392 = vbcast.lane.b32.xlu1 %v390_v35, 256 }
  0x2e   :  { %339 = vbcast.lane.b32.xlu0 %v337_v36, 256  ;;  %399 = vbcast.lane.b32.xlu1 %v397_v37, 256 }
  0x32   :  { %448 = vbcast.lane.b32.xlu0 %v446_v39, 256  ;;  %385 = vbcast.lane.b32.xlu1 %v383_v40, 256 }
  0x36   :  { %406 = vbcast.lane.b32.xlu0 %v404_v41, 256  ;;  %455 = vbcast.lane.b32.xlu1 %v453_v42, 256 }
  0x3a   :  { %413 = vbcast.lane.b32.xlu0 %v411_v43, 256  ;;  %441 = vbcast.lane.b32.xlu1 %v439_v44, 256 }
  0x3e   :  { %462 = vbcast.lane.b32.xlu0 %v460_v45, 256  ;;  %420 = vbcast.lane.b32.xlu1 %v418_v46, 256 }
  0x42   :  { %469 = vbcast.lane.b32.xlu0 %v467_v47, 256  ;;  %427 = vbcast.lane.b32.xlu1 %v425_v48, 256 }
  0x46   :  { %476 = vbcast.lane.b32.xlu0 %v474_v49, 256  ;;  %434 = vbcast.lane.b32.xlu1 %v432_v50, 256 }
  0x4a   :  { %483 = vbcast.lane.b32.xlu0 %v481_v51, 256  ;;  %490 = vbcast.lane.b32.xlu1 %v488_v52, 256 }
  0x4e   :  { %644 = vperm.xlu1 %2872, %v61_v53   ;;  %639 = vperm.xlu0 %2871, %v60_v54  }
  0x52   :  { %2874 = vset.pattern.permute.xlu0 %v2904_v0  ;;  %2873 = vset.pattern.permute.xlu1 %v2904_v0 }
  0x53   :  { %701 = vperm.xlu0 %2874, %v61_v53   ;;  %697 = vperm.xlu1 %2873, %v60_v54  }
  0x57   :  { %2875 = vset.pattern.permute.xlu0 %v2901_v12  ;;  %2876 = vset.pattern.permute.xlu1 %v2901_v12 }
  0x80   :  { %v242_v59 = vpop.permute.xlu0 %241  ;;  %v298_v60 = vpop.permute.xlu1 %297 }
  0x81   :  { %v357_v32 = vmul.f32 %v2499_v29, %v298_v60  ;;  %v349_v33 = vmul.f32 %v2499_v29, %v242_v59 }
  0x84   :  { %v249_v61 = vpop.permute.xlu0 %248  ;;  %v235_v63 = vpop.permute.xlu1 %234 }
  0x85   :  { %v350_v34 = vmul.f32 %v2499_v29, %v249_v61  ;;  %v348_v35 = vmul.f32 %v2499_v29, %v235_v63 }
  0x88   :  { %v256_v62 = vpop.permute.xlu0 %255  ;;  %v305_v2 = vpop.permute.xlu1 %304 }
  0x89   :  { %v3105_v36 = vmul.f32 %v2499_v29, %v256_v62  ;;  %v358_v37 = vmul.f32 %v2499_v29, %v305_v2 }
  0x8c   :  { %v263_v1 = vpop.permute.xlu0 %262  ;;  %v291_v10 = vpop.permute.xlu1 %290 }
  0x8d   :  { %v3107_v38 = vmul.f32 %v2499_v29, %v263_v1  ;;  %v356_v39 = vmul.f32 %v2499_v29, %v291_v10 }
  0x90   :  { %v312_v3 = vpop.permute.xlu0 %311  ;;  %v270_v14 = vpop.permute.xlu1 %269 }
  0x91   :  { %v359_v40 = vmul.f32 %v2499_v29, %v312_v3  ;;  %v3109_v41 = vmul.f32 %v2499_v29, %v270_v14 }
  0x94   :  { %v319_v5 = vpop.permute.xlu0 %318  ;;  %v277_v18 = vpop.permute.xlu1 %276 }
  0x95   :  { %v360_v42 = vmul.f32 %v2499_v29, %v319_v5  ;;  %v3111_v43 = vmul.f32 %v2499_v29, %v277_v18 }
  0x98   :  { %v326_v13 = vpop.permute.xlu0 %325  ;;  %v284_v20 = vpop.permute.xlu1 %283 }
  0x99   :  { %v361_v45 = vmul.f32 %v2499_v29, %v326_v13  ;;  %v3115_v46 = vmul.f32 %v2499_v29, %v284_v20 }
  0x9c   :  { %v333_v16 = vpop.permute.xlu0 %332  ;;  %v3092_v22 = vpop.permute.xlu1 %392 }
  0x9d   :  { %v362_v47 = vmul.f32 %v2499_v29, %v333_v16 }
  0xa0   :  { %v340_v17 = vpop.permute.xlu0 %339  ;;  %v3096_v24 = vpop.permute.xlu1 %399 }
  0xa1   :  { %v3117_v48 = vmul.f32 %v2499_v29, %v340_v17 }
  0xa4   :  { %v449_v19 = vpop.permute.xlu0 %448  ;;  %v3098_v25 = vpop.permute.xlu1 %385 }
  0xa8   :  { %v3090_v21 = vpop.permute.xlu0 %406  ;;  %v456_v27 = vpop.permute.xlu1 %455 }
  0xac   :  { %v3094_v23 = vpop.permute.xlu0 %413  ;;  %v442_v30 = vpop.permute.xlu1 %441 }
  0xb0   :  { %v463_v12 = vpop.permute.xlu0 %462  ;;  %v3123_v51 = vpop.permute.xlu1 %420 }
  0xb4   :  { %v470_v26 = vpop.permute.xlu0 %469 }
  0xb8   :  { %v477_v28 = vpop.permute.xlu0 %476 }
  0xbc   :  { %v3103_v31 = vpop.permute.xlu0 %483 }
  0xc9   :  { %v3113_v44 = vpop.permute.xlu0 %639 }
  0xca   :  { %v3119_v49 = vpop.f32.mrf.mxu0  ;;  %v3121_v50 = vpop.f32.mrf.mxu1  ;;  %v647_v55 = vrot.slane %v3113_v44, 1  ;;  %v648_v60 = vrot.slane %v3113_v44, 2  ;;  %v649_v17 = vrot.slane %v3113_v44, 3 }
  0xcb   :  { %v372_v52 = vadd.f32 %v3121_v50, %v356_v39  ;;  %v373_v53 = vadd.f32 %v3121_v50, %v357_v32  ;;  %v374_v54 = vadd.f32 %v3121_v50, %v358_v37  ;;  %v375_v56 = vadd.f32 %v3121_v50, %v359_v40  ;;  %v995_v37 = vld [vmem:[%s3527_s8 + $0x18] sm:$0xff]  ;;  %v3145_v39 = vpop.permute.xlu1 %427 }
  0xcc   :  { %v376_v57 = vadd.f32 %v3121_v50, %v360_v42  ;;  %v377_v58 = vadd.f32 %v3121_v50, %v361_v45  ;;  %v3132_v59 = vpop.f32.mrf.mxu0  ;;  %v214_v1 = vpop.f32.mrf.mxu1  ;;  %v146_v2 = vmax.f32 %v3119_v49, 0.0 }
  0xcd   :  { %v500_v61 = vmax.f32 %v372_v52, 0.0  ;;  %v501_v62 = vmax.f32 %v373_v53, 0.0  ;;  %v502_v63 = vmax.f32 %v374_v54, 0.0  ;;  %v145_v0 = vmax.f32 %v3132_v59, 0.0  ;;  %v2500_v59 = vld [vmem:[%s3526_s7] ss:$0 sm:$0xff] }
  0xce   :  { %v503_v3 = vmax.f32 %v375_v56, 0.0  ;;  %v504_v5 = vmax.f32 %v376_v57, 0.0  ;;  %v505_v10 = vmax.f32 %v377_v58, 0.0  ;;  %v364_v32 = vadd.f32 %v348_v35, %v214_v1 }
  0xcf   :  { %v516_v13 = vmul.f32 %v500_v61, %v442_v30  ;;  %v517_v14 = vmul.f32 %v501_v62, %v449_v19  ;;  %v518_v16 = vmul.f32 %v502_v63, %v456_v27  ;;  %2692 = vmatpush3.msra.mxu1 %v145_v0  ;;  %v365_v40 = vadd.f32 %v349_v33, %v214_v1 }
  0xd0   :  { %v519_v18 = vmul.f32 %v503_v3, %v463_v12  ;;  %v520_v20 = vmul.f32 %v504_v5, %v470_v26  ;;  %v521_v29 = vmul.f32 %v505_v10, %v477_v28  ;;  %2694 = vmatmul.mubr.msk.f32.vlgmr.msra.gmra.mxu1 %vm63_vm0, %v3021_v8  ;;  %2696 = vmatprep.subr.mxu1 %v2902_v15  ;;  %v650_v63 = vrot.slane %v3113_v44, 4 }
  0xd1   :  { %v581_v19 = vsel %vm524_vm4, %v516_v13, 0.0  ;;  %v588_v27 = vsel %vm524_vm4, %v517_v14, 0.0  ;;  %v595_v30 = vsel %vm524_vm4, %v518_v16, 0.0  ;;  %2698 = vmatprep.mubr.msk.f32.mxu1 %vm2903_vm3, %v2902_v15  ;;  %2697 = vmatpush3.msra.mxu1 %v146_v2  ;;  %v366_v33 = vadd.f32 %v350_v34, %v214_v1 }
  0xd2   :  { %v582_v12 = vrot.slane %v581_v19, 4  ;;  %v589_v26 = vrot.slane %v588_v27, 4  ;;  %v596_v28 = vrot.slane %v595_v30, 4  ;;  %v602_v35 = vsel %vm524_vm4, %v519_v18, 0.0  ;;  %2712 = vmatprep.subr.mxu1 %v995_v37 }
  0xd3   :  { %v603_v42 = vrot.slane %v602_v35, 4  ;;  %v3157_v45 = vsel %vm524_vm4, %v520_v20, 0.0  ;;  %v616_v52 = vsel %vm524_vm4, %v521_v29, 0.0  ;;  %v367_v57 = vadd.f32 %v3105_v36, %v214_v1  ;;  %v435_v36 = vpop.permute.xlu1 %434 }
  0xd4   :  { %v583_v53 = vadd.f32 %v582_v12, %v581_v19  ;;  %v590_v54 = vadd.f32 %v589_v26, %v588_v27  ;;  %v3160_v56 = vadd.f32 %v596_v28, %v595_v30  ;;  %2699 = vmatmul.mubr.msk.f32.vlgmr.msra.gmra.mxu1 %vm63_vm0, %v3016_v7  ;;  %v617_v58 = vrot.slane %v616_v52, 4 }
  0xd5   :  { %v368_v61 = vadd.f32 %v3107_v38, %v214_v1  ;;  %v378_v62 = vadd.f32 %v3121_v50, %v362_v47  ;;  %2713 = vmatpush3.msra.mxu1 %v995_v37  ;;  %v3168_v34 = vadd.f32 %v603_v42, %v602_v35  ;;  %v610_v5 = vrot.slane %v3157_v45, 4 }
  0xd6   :  { %v584_v3 = vrot.slane %v583_v53, 2  ;;  %v369_v10 = vadd.f32 %v3109_v41, %v214_v1  ;;  %v618_v13 = vadd.f32 %v617_v58, %v616_v52  ;;  %v492_v14 = vmax.f32 %v364_v32, 0.0 }
  0xd7   :  { %v493_v16 = vmax.f32 %v365_v40, 0.0  ;;  %v494_v7 = vmax.f32 %v366_v33, 0.0  ;;  %v591_v18 = vrot.slane %v590_v54, 2  ;;  %v598_v38 = vrot.slane %v3160_v56, 2  ;;  %v491_v52 = vpop.permute.xlu1 %490 }
  0xd8   :  { %v370_v47 = vadd.f32 %v3111_v43, %v214_v1  ;;  %v495_v20 = vmax.f32 %v367_v57, 0.0  ;;  %v3174_v29 = vadd.f32 %v584_v3, %v583_v53  ;;  %v371_v37 = vadd.f32 %v3115_v46, %v214_v1 }
  0xd9   :  { %v496_v19 = vmax.f32 %v368_v61, 0.0  ;;  %v508_v27 = vmul.f32 %v492_v14, %v3098_v25  ;;  %v619_v30 = vrot.slane %v618_v13, 2  ;;  %v509_v41 = vmul.f32 %v493_v16, %v3092_v22 }
  0xda   :  { %v510_v32 = vmul.f32 %v494_v7, %v3096_v24  ;;  %v511_v40 = vmul.f32 %v495_v20, %v3090_v21  ;;  %v497_v12 = vmax.f32 %v369_v10, 0.0  ;;  %v506_v28 = vmax.f32 %v378_v62, 0.0 }
  0xdb   :  { %v525_v26 = vsel %vm524_vm4, %v508_v27, 0.0  ;;  %v379_v43 = vadd.f32 %v3121_v50, %v3117_v48  ;;  %v532_v46 = vsel %vm524_vm4, %v509_v41, 0.0  ;;  %v3187_v42 = vadd.f32 %v591_v18, %v590_v54 }
  0xdc   :  { %v526_v35 = vrot.slane %v525_v26, 4  ;;  %v539_v1 = vsel %vm524_vm4, %v510_v32, 0.0  ;;  %v546_v25 = vsel %vm524_vm4, %v511_v40, 0.0  ;;  %v512_v22 = vmul.f32 %v496_v19, %v3094_v23 }
  0xdd   :  { %v533_v24 = vrot.slane %v532_v46, 4  ;;  %v540_v21 = vrot.slane %v539_v1, 4  ;;  %v547_v53 = vrot.slane %v546_v25, 4  ;;  %v522_v57 = vmul.f32 %v506_v28, %v3103_v31 }
  0xde   :  { %v527_v33 = vadd.f32 %v526_v35, %v525_v26  ;;  %v507_v58 = vmax.f32 %v379_v43, 0.0  ;;  %v3191_v48 = vadd.f32 %v619_v30, %v618_v13  ;;  %v498_v50 = vmax.f32 %v370_v47, 0.0 }
  0xdf   :  { %v534_v61 = vadd.f32 %v533_v24, %v532_v46  ;;  %v541_v62 = vadd.f32 %v540_v21, %v539_v1  ;;  %v623_v10 = vsel %vm524_vm4, %v522_v57, 0.0  ;;  %v513_v14 = vmul.f32 %v497_v12, %v3123_v51 }
  0xe0   :  { %v528_v3 = vrot.slane %v527_v33, 2  ;;  %v523_v54 = vmul.f32 %v507_v58, %v491_v52  ;;  %v624_v16 = vrot.slane %v623_v10, 4  ;;  %v499_v7 = vmax.f32 %v371_v37, 0.0 }
  0xe1   :  { %v535_v23 = vrot.slane %v534_v61, 2  ;;  %v542_v18 = vrot.slane %v541_v62, 2  ;;  %v548_v31 = vadd.f32 %v547_v53, %v546_v25  ;;  %v553_v13 = vsel %vm524_vm4, %v512_v22, 0.0 }
  0xe2   :  { %v630_v20 = vsel %vm524_vm4, %v523_v54, 0.0  ;;  %v529_v19 = vadd.f32 %v528_v3, %v527_v33  ;;  %v625_v27 = vadd.f32 %v624_v16, %v623_v10  ;;  %v514_v32 = vmul.f32 %v498_v50, %v3145_v39 }
  0xe3   :  { %v631_v47 = vrot.slane %v630_v20, 4  ;;  %v536_v30 = vadd.f32 %v535_v23, %v534_v61  ;;  %v543_v41 = vadd.f32 %v542_v18, %v541_v62  ;;  %v549_v40 = vrot.slane %v548_v31, 2 }
  0xe4   :  { %v554_v26 = vrot.slane %v553_v13, 4  ;;  %v560_v51 = vsel %vm524_vm4, %v513_v14, 0.0  ;;  %v626_v12 = vrot.slane %v625_v27, 2  ;;  %v515_v37 = vmul.f32 %v499_v7, %v435_v36 }
  0xe5   :  { %v632_v28 = vadd.f32 %v631_v47, %v630_v20  ;;  %v530_v43 = vrot.slane %v529_v19, 1  ;;  %v537_v35 = vrot.slane %v536_v30, 1  ;;  %v550_v46 = vadd.f32 %v549_v40, %v548_v31 }
  0xe6   :  { %v555_v1 = vadd.f32 %v554_v26, %v553_v13  ;;  %v561_v25 = vrot.slane %v560_v51, 4  ;;  %v621_v22 = vrot.slane %v3191_v48, 1  ;;  %v3200_v24 = vadd.f32 %v626_v12, %v625_v27 }
  0xe7   :  { %v633_v21 = vrot.slane %v632_v28, 2  ;;  %v544_v52 = vrot.slane %v543_v41, 1  ;;  %v551_v33 = vrot.slane %v550_v46, 1  ;;  %v567_v57 = vsel %vm524_vm4, %v514_v32, 0.0 }
  0xe8   :  { %v556_v39 = vrot.slane %v555_v1, 2  ;;  %v562_v53 = vadd.f32 %v561_v25, %v560_v51  ;;  %v531_v50 = vadd.f32 %v530_v43, %v529_v19  ;;  %v568_v36 = vrot.slane %v567_v57, 4 }
  0xe9   :  { %v3203_v58 = vadd.f32 %v633_v21, %v632_v28  ;;  %v574_v61 = vsel %vm524_vm4, %v515_v37, 0.0  ;;  %v538_v62 = vadd.f32 %v537_v35, %v536_v30  ;;  %v628_v14 = vrot.slane %v3200_v24, 1 }
  0xea   :  { %v557_v3 = vadd.f32 %v556_v39, %v555_v1  ;;  %v563_v10 = vrot.slane %v562_v53, 2  ;;  %v575_v54 = vrot.slane %v574_v61, 4  ;;  %v545_v23 = vadd.f32 %v544_v52, %v543_v41 }
  0xeb   :  { %v552_v16 = vadd.f32 %v551_v33, %v550_v46  ;;  %v569_v7 = vadd.f32 %v568_v36, %v567_v57  ;;  %v635_v18 = vrot.slane %v3203_v58, 1  ;;  %v651_v27 = vrot.slane %v3113_v44, 5  ;;  %v3227_v36 = vpop.permute.xlu1 %644 }
  0xec   :  { %v558_v20 = vrot.slane %v557_v3, 1  ;;  %v564_v31 = vadd.f32 %v563_v10, %v562_v53  ;;  %v576_v19 = vadd.f32 %v575_v54, %v574_v61  ;;  %v652_v47 = vrot.slane %v3113_v44, 6 }
  0xed   :  { %v570_v13 = vrot.slane %v569_v7, 2  ;;  %v653_v30 = vrot.slane %v3113_v44, 7  ;;  %v676_v26 = vmul.f32 %v647_v55, %v538_v62  ;;  %v675_v12 = vmul.f32 %v3113_v44, %v531_v50 }
  0xee   :  { %v559_v32 = vadd.f32 %v558_v20, %v557_v3  ;;  %v565_v40 = vrot.slane %v564_v31, 1  ;;  %v577_v41 = vrot.slane %v576_v19, 2  ;;  %v677_v28 = vmul.f32 %v648_v60, %v545_v23 }
  0xef   :  { %v571_v51 = vadd.f32 %v570_v13, %v569_v7  ;;  %v678_v37 = vmul.f32 %v649_v17, %v552_v16  ;;  %v728_v1 = vrot.slane %v676_v26, 7  ;;  %v586_v55 = vrot.slane %v3174_v29, 1 }
  0xf0   :  { %v566_v43 = vadd.f32 %v565_v40, %v564_v31  ;;  %v578_v35 = vadd.f32 %v577_v41, %v576_v19  ;;  %v679_v46 = vmul.f32 %v650_v63, %v559_v32  ;;  %v731_v21 = vrot.slane %v677_v28, 6 }
  0xf1   :  { %v572_v25 = vrot.slane %v571_v51, 1  ;;  %v734_v52 = vrot.slane %v678_v37, 5  ;;  %v730_v53 = vsel %vm729_vm5, %v728_v1, %v675_v12  ;;  %v593_v50 = vrot.slane %v3187_v42, 1 }
  0xf2   :  { %v579_v33 = vrot.slane %v578_v35, 1  ;;  %v680_v39 = vmul.f32 %v651_v27, %v566_v43  ;;  %v737_v60 = vrot.slane %v679_v46, 4  ;;  %v733_v17 = vsel %vm732_vm6, %v731_v21, %v730_v53 }
  0xf3   :  { %v573_v57 = vadd.f32 %v572_v25, %v571_v51  ;;  %v599_v63 = vadd.f32 %v598_v38, %v3160_v56  ;;  %v736_v62 = vsel %vm735_vm7, %v734_v52, %v733_v17  ;;  %v605_v10 = vrot.slane %v3168_v34, 2 }
  0xf4   :  { %v580_v61 = vadd.f32 %v579_v33, %v578_v35  ;;  %v740_v3 = vrot.slane %v680_v39, 3  ;;  %v739_v23 = vsel %vm738_vm8, %v737_v60, %v736_v62  ;;  %v594_v16 = vadd.f32 %v593_v50, %v3187_v42 }
  0xf5   :  { %v681_v54 = vmul.f32 %v652_v47, %v573_v57  ;;  %v600_v7 = vrot.slane %v599_v63, 1  ;;  %v606_v19 = vadd.f32 %v605_v10, %v3168_v34  ;;  %v611_v56 = vadd.f32 %v610_v5, %v3157_v45 }
  0xf6   :  { %v682_v20 = vmul.f32 %v653_v30, %v580_v61  ;;  %v742_v31 = vsel %vm741_vm9, %v740_v3, %v739_v23  ;;  %v654_v27 = vrot.slane %v3227_v36, 1  ;;  %v655_v47 = vrot.slane %v3227_v36, 2  ;;  %v993_v23 = vld [vmem:[%s3527_s8 + $0x8] sm:$0xff] }
  0xf7   :  { %v743_v38 = vrot.slane %v681_v54, 2  ;;  %v601_v13 = vadd.f32 %v600_v7, %v599_v63  ;;  %v607_v40 = vrot.slane %v606_v19, 1  ;;  %v612_v41 = vrot.slane %v611_v56, 2  ;;  %v994_v54 = vld [vmem:[%s3527_s8 + $0x10] sm:$0xff]  ;;  %v1167_v7 = vld [vmem:[%s3529_s10 + $0x18] sm:$0xff] }
  0xf8   :  { %v746_v32 = vrot.slane %v682_v20, 1  ;;  %v656_v42 = vrot.slane %v3227_v36, 3  ;;  %v622_v30 = vadd.f32 %v621_v22, %v3191_v48  ;;  %v587_v45 = vadd.f32 %v586_v55, %v3174_v29  ;;  %2714 = vmatprep.subr.mxu1 %v994_v54  ;;  %v999_v20 = vld [vmem:[%s3528_s9 + $0x18] sm:$0xff] }
  0xf9   :  { %v745_v34 = vsel %vm744_vm10, %v743_v38, %v742_v31  ;;  %v629_v5 = vadd.f32 %v628_v14, %v3200_v24  ;;  %v608_v51 = vadd.f32 %v607_v40, %v606_v19  ;;  %v613_v12 = vadd.f32 %v612_v41, %v611_v56  ;;  %2715 = vmatpush3.msra.mxu1 %v994_v54  ;;  %v998_v31 = vld [vmem:[%s3528_s9 + $0x10] sm:$0xff]  ;;  %v997_v19 = vld [vmem:[%s3528_s9 + $0x8] sm:$0xff]  ;;  %v996_v56 = vld [vmem:[%s3528_s9] sm:$0xff] }
  0xfa   :  { %v748_v26 = vsel %vm747_vm11, %v746_v32, %v745_v34  ;;  %v636_v28 = vadd.f32 %v635_v18, %v3203_v58  ;;  %v658_v48 = vrot.slane %v3227_v36, 5  ;;  %v684_v22 = vmul.f32 %v654_v27, %v594_v16  ;;  %2716 = vmatprep.subr.mxu1 %v993_v23  ;;  %v992_v16 = vld [vmem:[%s3527_s8] sm:$0xff]  ;;  %2701 = vmatprep.subr.mxu0 %v999_v20  ;;  %v1166_v40 = vld [vmem:[%s3529_s10 + $0x10] sm:$0xff]  ;;  %v698_v34 = vpop.permute.xlu1 %697  ;;  %v2530_v54 = vld [vmem:[%s3529_s10 + $0x38] sm:$0xff] }
  0xfb   :  { %2688 = vmatprep.mubr.msk.f32.mxu0 %vm524_vm4, %v748_v26  ;;  %v685_v37 = vmul.f32 %v655_v47, %v601_v13  ;;  %v614_v43 = vrot.slane %v613_v12, 1  ;;  %v657_v29 = vrot.slane %v3227_v36, 4  ;;  %v659_v35 = vrot.slane %v3227_v36, 6  ;;  %2717 = vmatpush3.msra.mxu1 %v993_v23 }
  0xfc   :  { %v686_v24 = vmul.f32 %v656_v42, %v608_v51  ;;  %v660_v14 = vrot.slane %v3227_v36, 7  ;;  %v683_v46 = vmul.f32 %v3227_v36, %v587_v45  ;;  %v749_v1 = vrot.slane %v684_v22, 7  ;;  %2718 = vmatprep.subr.mxu1 %v992_v16  ;;  %v1165_v42 = vld [vmem:[%s3529_s10 + $0x8] sm:$0xff]  ;;  %v1170_v22 = vld [vmem:[%s3530_s11 + $0x10] sm:$0xff] }
  0xfd   :  { %v751_v25 = vrot.slane %v685_v37, 6  ;;  %v615_v21 = vadd.f32 %v614_v43, %v613_v12  ;;  %v688_v58 = vmul.f32 %v658_v48, %v622_v30  ;;  %v689_v33 = vmul.f32 %v659_v35, %v629_v5  ;;  %2719 = vmatpush3.msra.mxu1 %v992_v16  ;;  %v1164_v30 = vld [vmem:[%s3529_s10] sm:$0xff]  ;;  %v1171_v48 = vld [vmem:[%s3530_s11 + $0x18] sm:$0xff]  ;;  %v1169_v37 = vld [vmem:[%s3530_s11 + $0x8] sm:$0xff] }
  0xfe   :  { %v750_v18 = vsel %vm729_vm5, %v749_v1, %v683_v46  ;;  %v753_v52 = vrot.slane %v686_v24, 5  ;;  %v690_v53 = vmul.f32 %v660_v14, %v636_v28  ;;  %2734 = vmatprep.subr.mxu1 %v1167_v7  ;;  %v710_v5 = vmul.f32 %v2500_v59, %v698_v34  ;;  %v1168_v43 = vld [vmem:[%s3530_s11] sm:$0xff] }
  0xff   :  { %v687_v55 = vmul.f32 %v657_v29, %v615_v21  ;;  %v752_v39 = vsel %vm732_vm6, %v751_v25, %v750_v18  ;;  %v757_v17 = vrot.slane %v688_v58, 3  ;;  %v759_v63 = vrot.slane %v689_v33, 2  ;;  %v2522_v29 = vld [vmem:[%s3528_s9 + $0x38] sm:$0xff]  ;;  %v2521_v18 = vld [vmem:[%s3528_s9 + $0x30] sm:$0xff] }
 0x100   :  { %v754_v60 = vsel %vm735_vm7, %v753_v52, %v752_v39  ;;  %v761_v62 = vrot.slane %v690_v53, 1  ;;  %v2520_v52 = vld [vmem:[%s3528_s9 + $0x28] sm:$0xff] }
 0x101   :  { %v755_v57 = vrot.slane %v687_v55, 4  ;;  %v2519_v55 = vld [vmem:[%s3528_s9 + $0x20] sm:$0xff] }
 0x103   :  { %v756_v50 = vsel %vm738_vm8, %v755_v57, %v754_v60 }
 0x104   :  { %v758_v61 = vsel %vm741_vm9, %v757_v17, %v756_v50 }
 0x105   :  { %v760_v3 = vsel %vm744_vm10, %v759_v63, %v758_v61  ;;  %v2518_v61 = vld [vmem:[%s3527_s8 + $0x38] sm:$0xff] }
 0x106   :  { %v762_v10 = vsel %vm747_vm11, %v761_v62, %v760_v3  ;;  %v3365_v62 = vld [vmem:[%s3538_s15 + $0x8] sm:$0xff] }
 0x107   :  { %2689 = vmatmul.mubr.msk.f32.vlgmr.msra.gmra.mxu0 %vm524_vm4, %v762_v10  ;;  %v2516_v3 = vld [vmem:[%s3527_s8 + $0x28] sm:$0xff]  ;;  %v2515_v10 = vld [vmem:[%s3527_s8 + $0x20] sm:$0xff] }
 0x108   :  { %2702 = vmatpush3.msra.mxu0 %v999_v20 }
 0x109   :  { %2703 = vmatprep.subr.mxu0 %v998_v31 }
 0x10a   :  { %2704 = vmatpush3.msra.mxu0 %v998_v31 }
 0x10b   :  { %2705 = vmatprep.subr.mxu0 %v997_v19 }
 0x10c   :  { %2706 = vmatpush3.msra.mxu0 %v997_v19 }
 0x10d   :  { %2707 = vmatprep.subr.mxu0 %v996_v56 }
 0x10e   :  { %2708 = vmatpush3.msra.mxu0 %v996_v56  ;;  %v2529_v56 = vld [vmem:[%s3529_s10 + $0x30] sm:$0xff] }
 0x10f   :  { %2723 = vmatprep.subr.mxu0 %v1171_v48 }
 0x190   :  { %v913_v38 = vpop.f32.mrf.mxu1 }
 0x191   :  { %v990_v13 = vmul.f32 %v913_v38, %v3113_v44  ;;  %v2528_v38 = vld [vmem:[%s3529_s10 + $0x28] sm:$0xff] }
 0x192   :  { %v2695_v27 = vpop.f32.mrf.mxu1 }
 0x193   :  { %2720 = vmatprep.mubr.msk.f32.mxu1 %vm524_vm4, %v990_v13  ;;  %v2527_v13 = vld [vmem:[%s3529_s10 + $0x20] sm:$0xff]  ;;  %v2534_v27 = vld [vmem:[%s3530_s11 + $0x38] sm:$0xff] }
 0x194   :  { %v986_v47 = vpop.f32.mrf.mxu1 }
 0x195   :  { %v991_v32 = vmul.f32 %v986_v47, %v3227_v36  ;;  %v2533_v47 = vld [vmem:[%s3530_s11 + $0x30] sm:$0xff] }
 0x196   :  { %v2700_v41 = vpop.f32.mrf.mxu1 }
 0x197   :  { %2721 = vmatmul.mubr.msk.f32.vlgmr.msra.gmra.mxu1 %vm524_vm4, %v991_v32  ;;  %v2532_v32 = vld [vmem:[%s3530_s11 + $0x28] sm:$0xff] }
 0x198   :  { %2735 = vmatpush3.msra.mxu1 %v1167_v7  ;;  %2742 = vmatprep.mubr.msk.f32.mxu1 %vm524_vm4, %v145_v0  ;;  %v702_v0 = vpop.permute.xlu0 %701 }
 0x199   :  { %2736 = vmatprep.subr.mxu1 %v1166_v40  ;;  %v711_v45 = vmul.f32 %v2500_v59, %v702_v0 }
 0x19a   :  { %2737 = vmatpush3.msra.mxu1 %v1166_v40  ;;  %v2531_v40 = vld [vmem:[%s3530_s11 + $0x20] sm:$0xff] }
 0x19b   :  { %2738 = vmatprep.subr.mxu1 %v1165_v42 }
 0x19c   :  { %2739 = vmatpush3.msra.mxu1 %v1165_v42 }
 0x19d   :  { %2740 = vmatprep.subr.mxu1 %v1164_v30 }
 0x19e   :  { %2741 = vmatpush3.msra.mxu1 %v1164_v30 }
 0x19f   :  { %2743 = vmatmul.mubr.msk.f32.vlgmr.msra.gmra.mxu1 %vm524_vm4, %v146_v2  ;;  %2745 = vmatprep.subr.mxu1 %v2902_v15 }
 0x1a0   :  { %2747 = vmatprep.mubr.msk.f32.mxu1 %vm2903_vm3, %v2902_v15 }
 0x1c7   :  { %v2690_v26 = vpop.f32.mrf.mxu0 }
 0x1c8   :  { %v839_v51 = vadd.f32 %v2690_v26, %v711_v45 }
 0x1c9   :  { %v833_v12 = vpop.f32.mrf.mxu0 }
 0x1ca   :  { %v834_v28 = vadd.f32 %v833_v12, %v710_v5  ;;  %v3318_v2 = vmax.f32 %v839_v51, 0.0 }
 0x1cc   :  { %v3316_v49 = vmax.f32 %v834_v28, 0.0 }
 0x1ce   :  { %2709 = vmatprep.mubr.msk.f32.mxu0 %vm524_vm4, %v3316_v49 }
 0x1cf   :  { %2710 = vmatmul.mubr.msk.f32.vlgmr.msra.gmra.mxu0 %vm524_vm4, %v3318_v2 }
 0x1d0   :  { %2724 = vmatpush3.msra.mxu0 %v1171_v48 }
 0x1d1   :  { %2725 = vmatprep.subr.mxu0 %v1170_v22 }
 0x1d2   :  { %2726 = vmatpush3.msra.mxu0 %v1170_v22 }
 0x1d3   :  { %2727 = vmatprep.subr.mxu0 %v1169_v37 }
 0x1d4   :  { %2728 = vmatpush3.msra.mxu0 %v1169_v37 }
 0x1d5   :  { %2729 = vmatprep.subr.mxu0 %v1168_v43 }
 0x1d6   :  { %2730 = vmatpush3.msra.mxu0 %v1168_v43  ;;  %v2544_v43 = vld [vmem:[%s3527_s8 + $0x58] sm:$0xff] }
 0x1d7   :  { %2755 = vmatprep.subr.mxu0 %v2522_v29 }
 0x257   :  { %v2722_v35 = vpop.f32.mrf.mxu1 }
 0x259   :  { %v1153_v14 = vpop.f32.mrf.mxu1 }
 0x25f   :  { %v2744_v33 = vpop.f32.mrf.mxu1 }
 0x261   :  { %v1325_v53 = vpop.f32.mrf.mxu1 }
 0x28f   :  { %v2711_v24 = vpop.f32.mrf.mxu0 }
 0x290   :  { %v1159_v46 = vadd.f32 %v2722_v35, %v2711_v24  ;;  %v2548_v35 = vld [vmem:[%s3528_s9 + $0x58] sm:$0xff]  ;;  %v2547_v24 = vld [vmem:[%s3528_s9 + $0x50] sm:$0xff] }
 0x291   :  { %v1072_v1 = vpop.f32.mrf.mxu0 }
 0x292   :  { %v1154_v25 = vadd.f32 %v1153_v14, %v1072_v1  ;;  %v1163_v58 = vmax.f32 %v1159_v46, 0.0  ;;  %v2543_v14 = vld [vmem:[%s3527_s8 + $0x50] sm:$0xff]  ;;  %v2878_v46 = vld [vmem:[%s3538_s15] sm:$0xff]  ;;  %v2546_v1 = vld [vmem:[%s3528_s9 + $0x48] sm:$0xff] }
 0x294   :  { %v1162_v21 = vmax.f32 %v1154_v25, 0.0  ;;  %v2545_v25 = vld [vmem:[%s3528_s9 + $0x40] sm:$0xff] }
 0x296   :  { %2731 = vmatprep.mubr.msk.f32.mxu0 %vm524_vm4, %v1162_v21  ;;  %v2541_v21 = vld [vmem:[%s3527_s8 + $0x40] sm:$0xff] }
 0x297   :  { %2732 = vmatmul.mubr.msk.f32.vlgmr.msra.gmra.mxu0 %vm524_vm4, %v1163_v58  ;;  %v2556_v58 = vld [vmem:[%s3529_s10 + $0x58] sm:$0xff] }
 0x298   :  { %2756 = vmatpush3.msra.mxu0 %v2522_v29  ;;  %2763 = vmatprep.mubr.msk.f32.mxu0 %vm524_vm4, %v3316_v49 }
 0x299   :  { %2757 = vmatprep.subr.mxu0 %v2521_v18 }
 0x29a   :  { %2758 = vmatpush3.msra.mxu0 %v2521_v18 }
 0x29b   :  { %2759 = vmatprep.subr.mxu0 %v2520_v52 }
 0x29c   :  { %2760 = vmatpush3.msra.mxu0 %v2520_v52 }
 0x29d   :  { %2761 = vmatprep.subr.mxu0 %v2519_v55 }
 0x29e   :  { %2762 = vmatpush3.msra.mxu0 %v2519_v55 }
 0x29f   :  { %2764 = vmatmul.mubr.msk.f32.vlgmr.msra.gmra.mxu0 %vm524_vm4, %v3318_v2  ;;  %2777 = vmatprep.subr.mxu0 %v2534_v27 }
 0x2a0   :  { %2778 = vmatpush3.msra.mxu0 %v2534_v27 }
 0x2a1   :  { %2779 = vmatprep.subr.mxu0 %v2533_v47 }
 0x2a2   :  { %2780 = vmatpush3.msra.mxu0 %v2533_v47 }
 0x2a3   :  { %2781 = vmatprep.subr.mxu0 %v2532_v32 }
 0x2a4   :  { %2782 = vmatpush3.msra.mxu0 %v2532_v32 }
 0x2a5   :  { %2783 = vmatprep.subr.mxu0 %v2531_v40 }
 0x2a6   :  { %2784 = vmatpush3.msra.mxu0 %v2531_v40  ;;  %v2567_v40 = vld [vmem:[%s3533_s14] ss:$0 sm:$0xff] }
 0x2a7   :  { %2799 = vmatprep.subr.mxu0 %v2902_v15 }
 0x357   :  { %v2733_v39 = vpop.f32.mrf.mxu0 }
 0x358   :  { %v1331_v57 = vadd.f32 %v2744_v33, %v2733_v39 }
 0x359   :  { %v1244_v60 = vpop.f32.mrf.mxu0 }
 0x35a   :  { %v1326_v17 = vadd.f32 %v1325_v53, %v1244_v60  ;;  %v1335_v63 = vmax.f32 %v1331_v57, 0.0  ;;  %v2555_v53 = vld [vmem:[%s3529_s10 + $0x50] sm:$0xff]  ;;  %v2554_v60 = vld [vmem:[%s3529_s10 + $0x48] sm:$0xff] }
 0x35b   :  { %v2559_v57 = vld [vmem:[%s3530_s11 + $0x50] sm:$0xff] }
 0x35c   :  { %v1334_v50 = vmax.f32 %v1326_v17, 0.0  ;;  %v2558_v17 = vld [vmem:[%s3530_s11 + $0x48] sm:$0xff] }
 0x35e   :  { %2746 = vmatpush3.msra.mxu1 %v1334_v50 }
 0x35f   :  { %2748 = vmatmul.mubr.msk.f32.vlgmr.msra.gmra.mxu1 %vm63_vm0, %v3021_v8  ;;  %2750 = vmatprep.subr.mxu1 %v2902_v15  ;;  %v2517_v8 = vld [vmem:[%s3527_s8 + $0x30] sm:$0xff]  ;;  %v2765_v41 = vpop.f32.mrf.mxu0 }
 0x360   :  { %2751 = vmatpush3.msra.mxu1 %v1335_v63  ;;  %2752 = vmatprep.mubr.msk.f32.mxu1 %vm2903_vm3, %v2902_v15 }
 0x361   :  { %2766 = vmatprep.subr.mxu1 %v2518_v61  ;;  %v1554_v30 = vpop.f32.mrf.mxu0 }
 0x363   :  { %2753 = vmatmul.mubr.msk.f32.vlgmr.msra.gmra.mxu1 %vm63_vm0, %v3365_v62 }
 0x364   :  { %2767 = vmatpush3.msra.mxu1 %v2518_v61 }
 0x365   :  { %2768 = vmatprep.subr.mxu1 %v2517_v8 }
 0x366   :  { %2769 = vmatpush3.msra.mxu1 %v2517_v8 }
 0x367   :  { %2770 = vmatprep.subr.mxu1 %v2516_v3 }
 0x368   :  { %2771 = vmatpush3.msra.mxu1 %v2516_v3 }
 0x369   :  { %2772 = vmatprep.subr.mxu1 %v2515_v10 }
 0x36a   :  { %2773 = vmatpush3.msra.mxu1 %v2515_v10 }
 0x36b   :  { %2788 = vmatprep.subr.mxu1 %v2530_v54 }
 0x41f   :  { %v1402_v23 = vpop.f32.mrf.mxu1 }
 0x420   :  { %v1476_v16 = vmul.f32 %v1402_v23, %v3113_v44 }
 0x421   :  { %v2749_v7 = vpop.f32.mrf.mxu1 }
 0x422   :  { %2774 = vmatprep.mubr.msk.f32.mxu1 %vm524_vm4, %v1476_v16  ;;  %v2323_v16 = vld [vmem:[%s3531_s12 + $0x18] sm:$0xff]  ;;  %v2322_v7 = vld [vmem:[%s3531_s12 + $0x10] sm:$0xff] }
 0x423   :  { %v1472_v20 = vpop.f32.mrf.mxu1 }
 0x424   :  { %v1477_v31 = vmul.f32 %v1472_v20, %v3227_v36  ;;  %v2321_v20 = vld [vmem:[%s3531_s12 + $0x8] sm:$0xff] }
 0x425   :  { %v2754_v19 = vpop.f32.mrf.mxu1 }
 0x426   :  { %2775 = vmatmul.mubr.msk.f32.vlgmr.msra.gmra.mxu1 %vm524_vm4, %v1477_v31  ;;  %v2320_v31 = vld [vmem:[%s3531_s12] sm:$0xff] }
 0x427   :  { %2789 = vmatpush3.msra.mxu1 %v2530_v54  ;;  %2796 = vmatprep.mubr.msk.f32.mxu1 %vm524_vm4, %v1334_v50  ;;  %v2557_v50 = vld [vmem:[%s3530_s11 + $0x40] sm:$0xff] }
 0x428   :  { %2790 = vmatprep.subr.mxu1 %v2529_v56 }
 0x429   :  { %2791 = vmatpush3.msra.mxu1 %v2529_v56 }
 0x42a   :  { %2792 = vmatprep.subr.mxu1 %v2528_v38 }
 0x42b   :  { %2793 = vmatpush3.msra.mxu1 %v2528_v38 }
 0x42c   :  { %2794 = vmatprep.subr.mxu1 %v2527_v13 }
 0x42d   :  { %2795 = vmatpush3.msra.mxu1 %v2527_v13 }
 0x42e   :  { %2797 = vmatmul.mubr.msk.f32.vlgmr.msra.gmra.mxu1 %vm524_vm4, %v1335_v63  ;;  %2804 = vmatprep.subr.mxu1 %v2902_v15 }
 0x42f   :  { %2806 = vmatprep.mubr.msk.f32.mxu1 %vm2903_vm3, %v2902_v15 }
 0x4e6   :  { %v2776_v42 = vpop.f32.mrf.mxu1 }
 0x4e7   :  { %v1641_v59 = vadd.f32 %v2776_v42, %v2765_v41 }
 0x4e8   :  { %v1635_v0 = vpop.f32.mrf.mxu1 }
 0x4e9   :  { %v1636_v34 = vadd.f32 %v1635_v0, %v1554_v30  ;;  %v1645_v5 = vmax.f32 %v1641_v59, 0.0 }
 0x4eb   :  { %v1644_v45 = vmax.f32 %v1636_v34, 0.0 }
 0x4ed   :  { %2785 = vmatprep.mubr.msk.f32.mxu0 %vm524_vm4, %v1644_v45 }
 0x4ee   :  { %2786 = vmatmul.mubr.msk.f32.vlgmr.msra.gmra.mxu0 %vm524_vm4, %v1645_v5  ;;  %v2798_v26 = vpop.f32.mrf.mxu1 }
 0x4ef   :  { %2801 = vmatprep.mubr.msk.f32.mxu0 %vm2903_vm3, %v2902_v15 }
 0x4f0   :  { %v1809_v28 = vpop.f32.mrf.mxu1 }
 0x5ae   :  { %v2787_v51 = vpop.f32.mrf.mxu0 }
 0x5af   :  { %v1815_v12 = vadd.f32 %v2798_v26, %v2787_v51 }
 0x5b0   :  { %v1728_v48 = vpop.f32.mrf.mxu0 }
 0x5b1   :  { %v1819_v22 = vmax.f32 %v1815_v12, 0.0  ;;  %v1810_v37 = vadd.f32 %v1809_v28, %v1728_v48 }
 0x5b3   :  { %v1818_v29 = vmax.f32 %v1810_v37, 0.0  ;;  %2805 = vmatpush3.msra.mxu1 %v1819_v22 }
 0x5b4   :  { %2807 = vmatmul.mubr.msk.f32.vlgmr.msra.gmra.mxu1 %vm63_vm0, %v3365_v62  ;;  %2820 = vmatprep.subr.mxu1 %v2544_v43 }
 0x5b5   :  { %2800 = vmatpush3.msra.mxu0 %v1818_v29  ;;  %2821 = vmatpush3.msra.mxu1 %v2544_v43 }
 0x5b6   :  { %2802 = vmatmul.mubr.msk.f32.vlgmr.msra.gmra.mxu0 %vm63_vm0, %v2878_v46  ;;  %2809 = vmatprep.subr.mxu0 %v2548_v35 }
 0x5b7   :  { %2810 = vmatpush3.msra.mxu0 %v2548_v35  ;;  %2817 = vmatprep.mubr.msk.f32.mxu0 %vm524_vm4, %v3316_v49  ;;  %v2542_v49 = vld [vmem:[%s3527_s8 + $0x48] sm:$0xff] }
 0x5b8   :  { %2811 = vmatprep.subr.mxu0 %v2547_v24  ;;  %2822 = vmatprep.subr.mxu1 %v2543_v14 }
 0x5b9   :  { %2812 = vmatpush3.msra.mxu0 %v2547_v24  ;;  %2823 = vmatpush3.msra.mxu1 %v2543_v14 }
 0x5ba   :  { %2813 = vmatprep.subr.mxu0 %v2546_v1  ;;  %2824 = vmatprep.subr.mxu1 %v2542_v49 }
 0x5bb   :  { %2814 = vmatpush3.msra.mxu0 %v2546_v1  ;;  %2825 = vmatpush3.msra.mxu1 %v2542_v49 }
 0x5bc   :  { %2815 = vmatprep.subr.mxu0 %v2545_v25  ;;  %2826 = vmatprep.subr.mxu1 %v2541_v21 }
 0x5bd   :  { %2816 = vmatpush3.msra.mxu0 %v2545_v25  ;;  %2827 = vmatpush3.msra.mxu1 %v2541_v21  ;;  %v2568_v25 = vld [vmem:[#allocation2] ss:$0 sm:$0xff] }
 0x5be   :  { %2818 = vmatmul.mubr.msk.f32.vlgmr.msra.gmra.mxu0 %vm524_vm4, %v3318_v2  ;;  %2842 = vmatprep.subr.mxu1 %v2556_v58  ;;  %v2566_v21 = vld [vmem:[%s3532_s13] ss:$0 sm:$0xff]  ;;  %s2905_s13 = smov [#allocation3]  }
 0x5bf   :  { %s2482_s27 = sshll.u32 %s2905_s13, 4  ;;  %s2483_s27 = int_to_ptr.vmem [resolvable:$true] %s2482_s27 }
 0x5c0   :  { %s2879_s9 = scalar_lea.vmem %s2483_s27, 32  ;;  %p2884_p1 = scmp.lt.s32.totalorder %s2483_s27, %s2483_s27 }
 0x5c1   :  { %p2880_p0 = scmp.ne.s32.totalorder %s2483_s27, %s2879_s9  ;;  %p2885_p2 = scmp.lt.s32.totalorder %s2879_s9, %s2879_s9 }
 0x5c3   :  { %p2886_p3 = por %p2885_p2, %p2884_p1 }
 0x5c5   :  { %p2887_p4 = pnand %p2886_p3, %p2880_p0 }
 0x674   :  { %v1956_v18 = vpop.f32.mrf.mxu1 }
 0x675   :  { %v1961_v33 = vmul.f32 %v1956_v18, %v3227_v36  ;;  %v2560_v36 = vld [vmem:[%s3530_s11 + $0x58] sm:$0xff] }
 0x676   :  { %v1886_v52 = vpop.f32.mrf.mxu0  ;;  %v2808_v2 = vpop.f32.mrf.mxu1  ;;  %2831 = vmatprep.subr.mxu0 %v2560_v36 }
 0x677   :  { %v1960_v55 = vmul.f32 %v1886_v52, %v3113_v44  ;;  %v2553_v44 = vld [vmem:[%s3529_s10 + $0x40] sm:$0xff]  ;;  %2832 = vmatpush3.msra.mxu0 %v2560_v36 }
 0x678   :  { %v2803_v39 = vpop.f32.mrf.mxu0  ;;  %2833 = vmatprep.subr.mxu0 %v2559_v57 }
 0x679   :  { %2828 = vmatprep.mubr.msk.f32.mxu1 %vm524_vm4, %v1960_v55  ;;  %2834 = vmatpush3.msra.mxu0 %v2559_v57 }
 0x67a   :  { %2829 = vmatmul.mubr.msk.f32.vlgmr.msra.gmra.mxu1 %vm524_vm4, %v1961_v33  ;;  %2835 = vmatprep.subr.mxu0 %v2558_v17 }
 0x67b   :  { %2843 = vmatpush3.msra.mxu1 %v2556_v58  ;;  %2850 = vmatprep.mubr.msk.f32.mxu1 %vm524_vm4, %v1818_v29 }
 0x67c   :  { %2844 = vmatprep.subr.mxu1 %v2555_v53  ;;  %2836 = vmatpush3.msra.mxu0 %v2558_v17 }
 0x67d   :  { %2845 = vmatpush3.msra.mxu1 %v2555_v53  ;;  %2837 = vmatprep.subr.mxu0 %v2557_v50 }
 0x67e   :  { %2846 = vmatprep.subr.mxu1 %v2554_v60  ;;  %2838 = vmatpush3.msra.mxu0 %v2557_v50  ;;  %v2819_v63 = vpop.f32.mrf.mxu0 }
 0x67f   :  { %2847 = vmatpush3.msra.mxu1 %v2554_v60  ;;  %2853 = vmatprep.subr.mxu0 %v2902_v15 }
 0x680   :  { %2848 = vmatprep.subr.mxu1 %v2553_v44  ;;  %v2038_v62 = vpop.f32.mrf.mxu0 }
 0x681   :  { %2849 = vmatpush3.msra.mxu1 %v2553_v44 }
 0x682   :  { %2851 = vmatmul.mubr.msk.f32.vlgmr.msra.gmra.mxu1 %vm524_vm4, %v1819_v22 }
 0x73a   :  { %v2830_v61 = vpop.f32.mrf.mxu1 }
 0x73b   :  { %v2125_v8 = vadd.f32 %v2830_v61, %v2819_v63  ;;  %v2463_v61 = vand.u32 127, %v229_v4 }
 0x73c   :  { %v2119_v3 = vpop.f32.mrf.mxu1 }
 0x73d   :  { %v2120_v10 = vadd.f32 %v2119_v3, %v2038_v62  ;;  %v2129_v23 = vmax.f32 %v2125_v8, 0.0  ;;  %v2466_v62 = vsub.s32 %v2463_v61, %v3010_v6 }
 0x73f   :  { %v2128_v54 = vmax.f32 %v2120_v10, 0.0 }
 0x741   :  { %2839 = vmatprep.mubr.msk.f32.mxu0 %vm524_vm4, %v2128_v54 }
 0x742   :  { %2840 = vmatmul.mubr.msk.f32.vlgmr.msra.gmra.mxu0 %vm524_vm4, %v2129_v23  ;;  %v2852_v19 = vpop.f32.mrf.mxu1 }
 0x743   :  { %2861 = vmatprep.mubr.msk.f32.mxu0 %vm2903_vm3, %v2902_v15  ;;  %2854 = vmatpush3.msra.mxu0 %v2323_v16 }
 0x744   :  { %2855 = vmatprep.subr.mxu0 %v2902_v15  ;;  %v2293_v13 = vpop.f32.mrf.mxu1 }
 0x745   :  { %2856 = vmatpush3.msra.mxu0 %v2322_v7 }
 0x746   :  { %2857 = vmatprep.subr.mxu0 %v2902_v15 }
 0x747   :  { %2858 = vmatpush3.msra.mxu0 %v2321_v20 }
 0x748   :  { %2859 = vmatprep.subr.mxu0 %v2902_v15 }
 0x749   :  { %2860 = vmatpush3.msra.mxu0 %v2320_v31 }
 0x802   :  { %v2841_v56 = vpop.f32.mrf.mxu0 }
 0x803   :  { %v2299_v38 = vadd.f32 %v2852_v19, %v2841_v56 }
 0x804   :  { %v2212_v27 = vpop.f32.mrf.mxu0 }
 0x805   :  { %v2303_v47 = vmax.f32 %v2299_v38, 0.0  ;;  %v2294_v32 = vadd.f32 %v2293_v13, %v2212_v27 }
 0x807   :  { %v2311_v41 = vsel %vm524_vm4, %v2303_v47, 0.0  ;;  %v2413_v42 = vmax.f32 %v2303_v47, 0.0  ;;  %v2302_v30 = vmax.f32 %v2294_v32, 0.0 }
 0x808   :  { %v2312_v59 = vrot.slane %v2311_v41, 4 }
 0x809   :  { %v2304_v0 = vsel %vm524_vm4, %v2302_v30, 0.0  ;;  %v2412_v15 = vmax.f32 %v2302_v30, 0.0  ;;  %v2422_v34 = vmul.f32 %v2567_v40, %v2413_v42 }
 0x80a   :  { %v2313_v45 = vadd.f32 %v2312_v59, %v2311_v41  ;;  %v2305_v5 = vrot.slane %v2304_v0, 4 }
 0x80b   :  { %v2421_v26 = vmul.f32 %v2567_v40, %v2412_v15  ;;  %v2426_v55 = vsel %vm524_vm4, %v2422_v34, 0.0 }
 0x80c   :  { %v2314_v51 = vrot.slane %v2313_v45, 2  ;;  %v2306_v12 = vadd.f32 %v2305_v5, %v2304_v0 }
 0x80d   :  { %v2423_v28 = vsel %vm524_vm4, %v2421_v26, 0.0 }
 0x80e   :  { %v2315_v48 = vadd.f32 %v2314_v51, %v2313_v45  ;;  %v2307_v22 = vrot.slane %v2306_v12, 2  ;;  %2424 = vadd.xlane.f32.xlu0 %v2423_v28 }
 0x810   :  { %v2316_v37 = vrot.slane %v2315_v48, 1  ;;  %v2308_v43 = vadd.f32 %v2307_v22, %v2306_v12 }
 0x812   :  { %v2317_v29 = vadd.f32 %v2316_v37, %v2315_v48  ;;  %v2309_v35 = vrot.slane %v2308_v43, 1 }
 0x814   :  { %v2310_v24 = vadd.f32 %v2309_v35, %v2308_v43  ;;  %v2319_v14 = vmul.f32 0.125, %v2317_v29 }
 0x816   :  { %v2318_v46 = vmul.f32 0.125, %v2310_v24 }
 0x818   :  { %v2326_v1 = vsel %vm729_vm5, %v2319_v14, %v2318_v46 }
 0x819   :  { %2862 = vmatmul.mubr.msk.f32.vlgmr.msra.gmra.mxu0 %vm524_vm4, %v2326_v1 }
 0x824   :  { %2449 = vperm.xlu0 %2875, %v2568_v25  }
 0x897   :  { %v2425_v33 = vpop.xlane.xlu0 %2424 }
 0x89f   :  { %v2450_v60 = vpop.permute.xlu0 %2449 }
 0x8d9   :  { %v2395_v49 = vpop.f32.mrf.mxu0 }
 0x8da   :  { %v2399_v58 = vmax.f32 %v2395_v49, 0.0 }
 0x8db   :  { %v2863_v18 = vpop.f32.mrf.mxu0 }
 0x8dc   :  { %v2407_v52 = vmul.f32 %v2566_v21, %v2399_v58 }
 0x8de   :  { %v2409_v2 = vsel %vm2408_vm12, %v2407_v52, 0.0 }
 0x8df   :  { %2410 = vadd.xlane.f32.xlu1 %v2409_v2 }
 0x8e3   :  { %2427 = vadd.xlane.f32.xlu1 %v2426_v55 }
 0x968   :  { %v2411_v39 = vpop.xlane.xlu1 %2410 }
 0x969   :  { %v2433_v53 = vrot.slane %v2411_v39, %v3030_v11  ;;  %v2437_v44 = vrot.slane %v2411_v39, %v3026_v9 }
 0x96b   :  { %v2440_v36 = vadd.f32 %v2433_v53, %v2425_v33 }
 0x96c   :  { %v2428_v57 = vpop.xlane.xlu1 %2427 }
 0x96d   :  { %v2452_v17 = vadd.f32 %v2450_v60, %v2440_v36  ;;  %v2441_v50 = vadd.f32 %v2437_v44, %v2428_v57 }
 0x96f   :  { %2457 = vperm.xlu1 %2876, %v2452_v17   ;;  %v2453_v63 = vadd.f32 %v2450_v60, %v2441_v50 }
 0x973   :  { %2460 = vperm.xlu1 %2876, %v2453_v63  }
 0x9ea   :  { %v2458_v8 = vpop.permute.xlu1 %2457 }
 0x9eb   :  { %v2467_v3 = vrot.slane %v2458_v8, %v2466_v62 }
 0x9ed   :  { %2475 = vst.msk [vmem:[#allocation3] sm:$0x1] %vm2474_vm13, %v2467_v3 }
 0x9ee   :  { %v2461_v11 = vpop.permute.xlu1 %2460 }
 0x9ef   :  { %v2471_v10 = vrot.slane %v2461_v11, %v2466_v62 }
 0x9f1   :  { %2476 = vst.msk [vmem:[#allocation3 + $0x1] sm:$0x1] %vm2474_vm13, %v2471_v10 }
 0x9f2   :  { %2890 = shalt.err (!%p2887_p4)
}
 0x9f3   :  { %s2906_s6 = smov 16   ;;  %s2907_s28 = smov 1  }
 0x9f4   :  { %2488 = dma.vmem_to_hbm [thread:$0]  %s2483_s27, 32, %s3535_s16, [#allocation4], %s2906_s6, %s2906_s6, %s2907_s28  }
 0x9f5   :  { %2899 = dma.done.wait [#allocation4], 32  }
 0x9f6   :  { %2900 = vsyncadd [#allocation4], 4294967264 }
 0x9f7   :  { %2492 = vsyncpa [#allocation4], 1 }

</bundles_post_ra>
